<compile_context>
chip_gen: v5e
topology: v5e:2x2
jax: 0.10.0
libtpu: 0.0.40
codegen_flags: <defaults>
</compile_context>

<pallas_src>
import functools

import jax
import jax.numpy as jnp
from jax.experimental import pallas as pl
from jax.experimental.pallas import tpu as pltpu


# --------------------------------------------------------------------------
# Fused kernel: LeakyReLU'd even-phase input -> down conv (+bias+ReLU)
#               -> phase-decomposed up conv (+bias) -> bf16 output + BN partials
# --------------------------------------------------------------------------
def _fused_unet_inner_kernel(xe_ref, wd_ref, bd_ref, wu_ref, bu_ref,
                             out_ref, s1_ref, s2_ref, y1p_ref,
                             *, H1, W1, C, O):
    M1 = H1 * W1
    xe = xe_ref[0]                                    # (H1+3, W1+3, C) bf16, already LeakyReLU'd

    # ---- down conv: Conv2d(C,C,k4,s2,p3,dil2) == 4x4 stride-1 conv on even phase.
    #      16 shifted matmuls; the "im2col" never materializes (stays as VMEM views).
    acc1 = jnp.zeros((M1, wd_ref.shape[2]), jnp.float32)
    for kh in range(4):
        for kw in range(4):
            tap = xe[kh:kh + H1, kw:kw + W1, :].reshape(M1, C)
            acc1 = acc1 + jnp.dot(tap, wd_ref[kh * 4 + kw],
                                  preferred_element_type=jnp.float32)
    y1 = jnp.maximum(acc1 + bd_ref[...], 0.0).astype(jnp.bfloat16)   # bias + ReLU fused

    # ---- zero-pad y1 spatially by 1 (halo for the 3x3 phase-decomposed up conv)
    y1p_ref[...] = jnp.zeros_like(y1p_ref)
    y1p_ref[1:H1 + 1, 1:W1 + 1, :] = y1.reshape(H1, W1, C)

    # ---- up conv: ConvTranspose2d(C,O,k4,s2,p1) via sub-pixel phase decomposition:
    #      9 shifted matmuls against the (9, C, 4*O) block-sparse phase weight.
    acc2 = jnp.zeros((M1, 4 * O), jnp.float32)
    for dy in range(3):
        for dx in range(3):
            tap = y1p_ref[dy:dy + H1, dx:dx + W1, :].reshape(M1, C)
            acc2 = acc2 + jnp.dot(tap, wu_ref[dy * 3 + dx],
                                  preferred_element_type=jnp.float32)
    acc2 = acc2 + bu_ref[...]

    # bf16 writeback (half the HBM traffic); BN partials in f32 from the f32 acc.
    out_ref[0] = acc2.astype(out_ref.dtype)
    s1_ref[...] = jnp.sum(acc2, axis=0, keepdims=True)[None]
    s2_ref[...] = jnp.sum(acc2 * acc2, axis=0, keepdims=True)[None]


# --------------------------------------------------------------------------
# One-time weight preparation (hoisted out of the forward pass)
# --------------------------------------------------------------------------
def prepare_params(params):
    """Matmul-ready bf16 weights: (tap, ci, co) down weight and the phase-decomposed
    (tap, ci, 4*O) transposed-conv weight.  No lane padding (see review: skip the
    128-lane padding strategy at tiny channel counts; production widths are already
    aligned)."""
    dw = params["down_w"]                       # (Cout=C, Cin=C, 4, 4)
    C = dw.shape[1]
    O = params["up_w"].shape[1]                 # up_w: (Cin=C, Cout=O, 4, 4)

    w_down = jnp.transpose(dw, (2, 3, 1, 0)).reshape(16, C, dw.shape[0])
    w_down = w_down.astype(jnp.bfloat16)
    b_down = params["down_b"].astype(jnp.float32).reshape(1, -1)

    # output parity ph -> ((ConvT kernel tap kh, 3x3 patch offset dy), ...)
    taps = {0: ((1, 1), (3, 0)), 1: ((0, 2), (2, 1))}
    wt = params["up_w"]
    Wp = jnp.zeros((3, 3, C, 4, O), wt.dtype)   # (dy, dx, ci, phase, o)
    for ph in (0, 1):
        for pw in (0, 1):
            p = 2 * ph + pw
            for kh, dy in taps[ph]:
                for kw, dx in taps[pw]:
                    Wp = Wp.at[dy, dx, :, p, :].set(wt[:, :, kh, kw])
    w_up = Wp.reshape(9, C, 4 * O).astype(jnp.bfloat16)
    b_up = jnp.tile(params["up_b"].astype(jnp.float32), 4).reshape(1, 4 * O)

    return {
        "w_down": w_down, "b_down": b_down,
        "w_up": w_up, "b_up": b_up,
        "gamma": params["bn_gamma"].astype(jnp.float32),
        "beta": params["bn_beta"].astype(jnp.float32),
    }


def _vmem_limit_bytes(kernel_bytes):
    """Generation-aware scoped-VMEM limit (review: don't hard-code 24 MiB)."""
    try:
        cap = int(pltpu.get_tpu_info().vmem_capacity_bytes)
    except Exception:                           # noqa: BLE001 - fall back conservatively
        cap = 64 << 20                          # v7x per-TensorCore
    want = max(2 * kernel_bytes + (8 << 20), 32 << 20)
    return int(max(min(want, (cap * 7) // 10), 16 << 20))


# --------------------------------------------------------------------------
# Forward pass
# --------------------------------------------------------------------------
def csa_innermost_forward(x_nchw, prep, *, eps=1e-5):
    N, C, H, W = x_nchw.shape
    assert H % 2 == 0 and W % 2 == 0, "odd sizes would need the bilinear fallback"
    assert prep["w_down"].shape[1] == C
    O = prep["gamma"].shape[0]
    Cd = prep["w_down"].shape[2]
    H1, W1 = H // 2, W // 2
    M1 = H1 * W1

    # NHWC (lane-dense) end to end; LeakyReLU applied once per element and fused by
    # XLA into the even-phase gather (padding zeros commute with LeakyReLU).
    x_nhwc = jnp.transpose(x_nchw, (0, 2, 3, 1))
    x_act = jnp.where(x_nhwc >= 0, x_nhwc, jnp.float32(0.2) * x_nhwc)
    x_even = jnp.pad(x_act, ((0, 0), (3, 3), (3, 3), (0, 0)))[:, ::2, ::2, :]
    x_even = x_even.astype(jnp.bfloat16)        # (N, H1+3, W1+3, C)

    wd, bd, wu, bu = prep["w_down"], prep["b_down"], prep["w_up"], prep["b_up"]

    # Per-step VMEM footprint (pipelined input/output blocks counted double-buffered,
    # weights counted twice as a worst case even though their block index is constant).
    kernel_bytes = (
        2 * (H1 + 3) * (W1 + 3) * C * 2                 # x_even block
        + 2 * (16 * C * Cd + 9 * C * 4 * O) * 2         # weights (bf16)
        + 2 * (Cd + 4 * O) * 4                          # biases (f32)
        + 2 * (M1 * 4 * O * 2 + 2 * 4 * O * 4)          # output + stats blocks
        + (H1 + 2) * (W1 + 2) * C * 2                   # y1 halo scratch
    )
    cost = pl.CostEstimate(
        flops=2 * N * M1 * (16 * C * Cd + 9 * C * 4 * O),
        transcendentals=0,
        bytes_accessed=(N * (H1 + 3) * (W1 + 3) * C * 2
                        + (16 * C * Cd + 9 * C * 4 * O) * 2
                        + N * M1 * 4 * O * 2 + 2 * N * 4 * O * 4),
    )

    kernel = functools.partial(_fused_unet_inner_kernel, H1=H1, W1=W1, C=C, O=O)

    out_raw, s1, s2 = pl.pallas_call(
        kernel,
        out_shape=(
            jax.ShapeDtypeStruct((N, M1, 4 * O), jnp.bfloat16),   # raw phase output
            jax.ShapeDtypeStruct((N, 1, 4 * O), jnp.float32),     # per-batch BN sum
            jax.ShapeDtypeStruct((N, 1, 4 * O), jnp.float32),     # per-batch BN sumsq
        ),
        grid=(N,),
        in_specs=[
            pl.BlockSpec((1, H1 + 3, W1 + 3, C), lambda n: (n, 0, 0, 0)),
            # Weights/biases: full-shape blocks with constant index -> fetched once.
            # (At production channel counts, single-buffer explicitly / K-tile; see TODO.)
            pl.BlockSpec(wd.shape, lambda n: (0, 0, 0)),
            pl.BlockSpec(bd.shape, lambda n: (0, 0)),
            pl.BlockSpec(wu.shape, lambda n: (0, 0, 0)),
            pl.BlockSpec(bu.shape, lambda n: (0, 0)),
        ],
        out_specs=(
            pl.BlockSpec((1, M1, 4 * O), lambda n: (n, 0, 0)),
            pl.BlockSpec((1, 1, 4 * O), lambda n: (n, 0, 0)),
            pl.BlockSpec((1, 1, 4 * O), lambda n: (n, 0, 0)),
        ),
        scratch_shapes=[pltpu.VMEM((H1 + 2, W1 + 2, C), jnp.bfloat16)],
        compiler_params=pltpu.CompilerParams(
            dimension_semantics=("parallel",),            # independent per batch element
            vmem_limit_bytes=_vmem_limit_bytes(kernel_bytes)),
        cost_estimate=cost,
    )(x_even, wd, bd, wu, bu)

    # BatchNorm (training mode): pool per-batch partials and the 4 phase blocks.
    cnt = jnp.float32(4 * N * M1)                          # = N * H * W
    sum1 = s1.reshape(N, 4, O).sum(axis=(0, 1))
    sum2 = s2.reshape(N, 4, O).sum(axis=(0, 1))
    mean = sum1 / cnt
    var = jnp.maximum(sum2 / cnt - mean * mean, 0.0)       # biased variance
    scale = prep["gamma"] * jax.lax.rsqrt(var + eps)
    shift = prep["beta"] - mean * scale

    # Affine BN + phase interleave (all fused by XLA into one lane-dense pass).
    y2 = out_raw.reshape(N, H1, W1, 2, 2, O).astype(jnp.float32) * scale + shift
    y2 = y2.transpose(0, 1, 3, 2, 4, 5).reshape(N, H, W, O)

    # Skip connection in NHWC (channel = lane axis), single NCHW transpose at the end.
    out_nhwc = jnp.concatenate([y2, x_nhwc], axis=-1)
    return jnp.transpose(out_nhwc, (0, 3, 1, 2))


# --------------------------------------------------------------------------
# Pure-XLA reference (PyTorch semantics), bf16-matched at the same cast points
# --------------------------------------------------------------------------
def reference_forward(x, params, eps=1e-5):
    f32 = jnp.float32
    bw = lambda a: a.astype(jnp.bfloat16).astype(f32)      # round through bf16
    xa = bw(jnp.where(x >= 0, x, jnp.float32(0.2) * x))
    y1 = jax.lax.conv_general_dilated(
        xa, bw(params["down_w"]), window_strides=(2, 2),
        padding=((3, 3), (3, 3)), rhs_dilation=(2, 2),
        dimension_numbers=("NCHW", "OIHW", "NCHW"))
    y1 = bw(jnp.maximum(y1 + params["down_b"][None, :, None, None], 0.0))
    w_t = jnp.flip(params["up_w"], axis=(2, 3)).transpose(1, 0, 2, 3)
    y2 = jax.lax.conv_general_dilated(
        y1, bw(w_t), window_strides=(1, 1),
        padding=((2, 2), (2, 2)), lhs_dilation=(2, 2),
        dimension_numbers=("NCHW", "OIHW", "NCHW"))
    y2 = y2 + params["up_b"][None, :, None, None]
    mean = y2.mean(axis=(0, 2, 3), keepdims=True)
    var = ((y2 - mean) ** 2).mean(axis=(0, 2, 3), keepdims=True)
    y2 = (y2 - mean) * jax.lax.rsqrt(var + eps)
    y2 = y2 * params["bn_gamma"][None, :, None, None] + params["bn_beta"][None, :, None, None]
    return jnp.concatenate([y2, x], axis=1)


# --------------------------------------------------------------------------
if __name__ == "__main__":
    key = jax.random.PRNGKey(0)
    N, C, H, W = 2, 4, 16, 16
    O = C                                    # innermost: input_nc == inner_nc == outer_nc

    k_x, k1, k2, k3, k4 = jax.random.split(key, 5)
    x = jax.random.normal(k_x, (N, C, H, W), dtype=jnp.float32)
    torch_params = {
        "down_w": 0.1 * jax.random.normal(k1, (C, C, 4, 4), jnp.float32),
        "down_b": 0.1 * jax.random.normal(k2, (C,), jnp.float32),
        "up_w": 0.1 * jax.random.normal(k3, (C, O, 4, 4), jnp.float32),
        "up_b": 0.1 * jax.random.normal(k4, (O,), jnp.float32),
        "bn_gamma": jnp.ones((O,), jnp.float32),
        "bn_beta": jnp.zeros((O,), jnp.float32),
    }

    prep = prepare_params(torch_params)      # hoisted one-time weight prep
    fwd = jax.jit(csa_innermost_forward)

    out = jax.block_until_ready(fwd(x, prep))
    assert out.shape == (N, O + C, H, W), out.shape
    assert out.dtype == jnp.float32
    assert bool(jnp.isfinite(out).all())

    ref = reference_forward(x, torch_params)
    max_err = float(jnp.max(jnp.abs(out - ref)))
    assert bool(jnp.allclose(out, ref, atol=5e-2, rtol=5e-2)), f"max|diff|={max_err}"

    print("KERNEL_OK")
</pallas_src>

<mosaic_0001>
module attributes {stable_mosaic.version = 11 : i64} {
  func.func @_fused_unet_inner_kernel(%arg0: i32, %arg1: memref<1x11x11x4xbf16, #tpu.memory_space<vmem>>, %arg2: memref<16x4x4xbf16, #tpu.memory_space<vmem>>, %arg3: memref<1x4xf32, #tpu.memory_space<vmem>>, %arg4: memref<9x4x16xbf16, #tpu.memory_space<vmem>>, %arg5: memref<1x16xf32, #tpu.memory_space<vmem>>, %arg6: memref<1x64x16xbf16, #tpu.memory_space<vmem>>, %arg7: memref<1x1x16xf32, #tpu.memory_space<vmem>>, %arg8: memref<1x1x16xf32, #tpu.memory_space<vmem>>, %arg9: memref<10x10x4xbf16, #tpu.memory_space<vmem>>) attributes {dimension_semantics = [#tpu.dimension_semantics<parallel>], iteration_bounds = array<i64: 2>, scalar_prefetch = 0 : i64, scratch_operands = 1 : i64, tpu.core_type = #tpu.core_type<tc>, window_params = [{transform_indices = @transform_0, window_bounds = array<i64: 1, 11, 11, 4>}, {pipeline_mode = #tpu.pipeline_mode<synchronous>, transform_indices = @transform_1, window_bounds = array<i64: 16, 4, 4>}, {pipeline_mode = #tpu.pipeline_mode<synchronous>, transform_indices = @transform_2, window_bounds = array<i64: 1, 4>}, {pipeline_mode = #tpu.pipeline_mode<synchronous>, transform_indices = @transform_3, window_bounds = array<i64: 9, 4, 16>}, {pipeline_mode = #tpu.pipeline_mode<synchronous>, transform_indices = @transform_4, window_bounds = array<i64: 1, 16>}, {transform_indices = @transform_5, window_bounds = array<i64: 1, 64, 16>}, {transform_indices = @transform_6, window_bounds = array<i64: 1, 1, 16>}, {transform_indices = @transform_7, window_bounds = array<i64: 1, 1, 16>}]} {
    %c0 = arith.constant 0 : index
    %c0_0 = arith.constant 0 : index
    %c0_1 = arith.constant 0 : index
    %c0_2 = arith.constant 0 : index
    %0 = vector.load %arg1[%c0, %c0_0, %c0_1, %c0_2] : memref<1x11x11x4xbf16, #tpu.memory_space<vmem>>, vector<1x11x11x4xbf16>
    %1 = vector.shape_cast %0 : vector<1x11x11x4xbf16> to vector<11x11x4xbf16>
    %cst = arith.constant 0.000000e+00 : f32
    %2 = vector.broadcast %cst : f32 to vector<64x4xf32>
    %3 = vector.extract_strided_slice %1 {offsets = [0, 0, 0], sizes = [8, 8, 4], strides = [1, 1, 1]} : vector<11x11x4xbf16> to vector<8x8x4xbf16>
    %4 = vector.shape_cast %3 : vector<8x8x4xbf16> to vector<64x4xbf16>
    %c0_3 = arith.constant 0 : index
    %c0_4 = arith.constant 0 : index
    %c0_5 = arith.constant 0 : index
    %5 = vector.load %arg2[%c0_3, %c0_4, %c0_5] : memref<16x4x4xbf16, #tpu.memory_space<vmem>>, vector<1x4x4xbf16>
    %6 = vector.shape_cast %5 : vector<1x4x4xbf16> to vector<4x4xbf16>
    %cst_6 = arith.constant dense<0.000000e+00> : vector<64x4xf32>
    %7 = tpu.matmul %4, %6, %cst_6 {dimension_numbers = #tpu.dot_dimension_numbers<[1], [0], [0], [1], [0, 0, 1, 1], [], []>} : vector<64x4xbf16>, vector<4x4xbf16>, vector<64x4xf32> -> vector<64x4xf32>
    %8 = arith.addf %2, %7 : vector<64x4xf32>
    %9 = vector.extract_strided_slice %1 {offsets = [0, 1, 0], sizes = [8, 8, 4], strides = [1, 1, 1]} : vector<11x11x4xbf16> to vector<8x8x4xbf16>
    %10 = vector.shape_cast %9 : vector<8x8x4xbf16> to vector<64x4xbf16>
    %c1 = arith.constant 1 : index
    %c0_7 = arith.constant 0 : index
    %c0_8 = arith.constant 0 : index
    %11 = vector.load %arg2[%c1, %c0_7, %c0_8] : memref<16x4x4xbf16, #tpu.memory_space<vmem>>, vector<1x4x4xbf16>
    %12 = vector.shape_cast %11 : vector<1x4x4xbf16> to vector<4x4xbf16>
    %cst_9 = arith.constant dense<0.000000e+00> : vector<64x4xf32>
    %13 = tpu.matmul %10, %12, %cst_9 {dimension_numbers = #tpu.dot_dimension_numbers<[1], [0], [0], [1], [0, 0, 1, 1], [], []>} : vector<64x4xbf16>, vector<4x4xbf16>, vector<64x4xf32> -> vector<64x4xf32>
    %14 = arith.addf %8, %13 : vector<64x4xf32>
    %15 = vector.extract_strided_slice %1 {offsets = [0, 2, 0], sizes = [8, 8, 4], strides = [1, 1, 1]} : vector<11x11x4xbf16> to vector<8x8x4xbf16>
    %16 = vector.shape_cast %15 : vector<8x8x4xbf16> to vector<64x4xbf16>
    %c2 = arith.constant 2 : index
    %c0_10 = arith.constant 0 : index
    %c0_11 = arith.constant 0 : index
    %17 = vector.load %arg2[%c2, %c0_10, %c0_11] : memref<16x4x4xbf16, #tpu.memory_space<vmem>>, vector<1x4x4xbf16>
    %18 = vector.shape_cast %17 : vector<1x4x4xbf16> to vector<4x4xbf16>
    %cst_12 = arith.constant dense<0.000000e+00> : vector<64x4xf32>
    %19 = tpu.matmul %16, %18, %cst_12 {dimension_numbers = #tpu.dot_dimension_numbers<[1], [0], [0], [1], [0, 0, 1, 1], [], []>} : vector<64x4xbf16>, vector<4x4xbf16>, vector<64x4xf32> -> vector<64x4xf32>
    %20 = arith.addf %14, %19 : vector<64x4xf32>
    %21 = vector.extract_strided_slice %1 {offsets = [0, 3, 0], sizes = [8, 8, 4], strides = [1, 1, 1]} : vector<11x11x4xbf16> to vector<8x8x4xbf16>
    %22 = vector.shape_cast %21 : vector<8x8x4xbf16> to vector<64x4xbf16>
    %c3 = arith.constant 3 : index
    %c0_13 = arith.constant 0 : index
    %c0_14 = arith.constant 0 : index
    %23 = vector.load %arg2[%c3, %c0_13, %c0_14] : memref<16x4x4xbf16, #tpu.memory_space<vmem>>, vector<1x4x4xbf16>
    %24 = vector.shape_cast %23 : vector<1x4x4xbf16> to vector<4x4xbf16>
    %cst_15 = arith.constant dense<0.000000e+00> : vector<64x4xf32>
    %25 = tpu.matmul %22, %24, %cst_15 {dimension_numbers = #tpu.dot_dimension_numbers<[1], [0], [0], [1], [0, 0, 1, 1], [], []>} : vector<64x4xbf16>, vector<4x4xbf16>, vector<64x4xf32> -> vector<64x4xf32>
    %26 = arith.addf %20, %25 : vector<64x4xf32>
    %27 = vector.extract_strided_slice %1 {offsets = [1, 0, 0], sizes = [8, 8, 4], strides = [1, 1, 1]} : vector<11x11x4xbf16> to vector<8x8x4xbf16>
    %28 = vector.shape_cast %27 : vector<8x8x4xbf16> to vector<64x4xbf16>
    %c4 = arith.constant 4 : index
    %c0_16 = arith.constant 0 : index
    %c0_17 = arith.constant 0 : index
    %29 = vector.load %arg2[%c4, %c0_16, %c0_17] : memref<16x4x4xbf16, #tpu.memory_space<vmem>>, vector<1x4x4xbf16>
    %30 = vector.shape_cast %29 : vector<1x4x4xbf16> to vector<4x4xbf16>
    %cst_18 = arith.constant dense<0.000000e+00> : vector<64x4xf32>
    %31 = tpu.matmul %28, %30, %cst_18 {dimension_numbers = #tpu.dot_dimension_numbers<[1], [0], [0], [1], [0, 0, 1, 1], [], []>} : vector<64x4xbf16>, vector<4x4xbf16>, vector<64x4xf32> -> vector<64x4xf32>
    %32 = arith.addf %26, %31 : vector<64x4xf32>
    %33 = vector.extract_strided_slice %1 {offsets = [1, 1, 0], sizes = [8, 8, 4], strides = [1, 1, 1]} : vector<11x11x4xbf16> to vector<8x8x4xbf16>
    %34 = vector.shape_cast %33 : vector<8x8x4xbf16> to vector<64x4xbf16>
    %c5 = arith.constant 5 : index
    %c0_19 = arith.constant 0 : index
    %c0_20 = arith.constant 0 : index
    %35 = vector.load %arg2[%c5, %c0_19, %c0_20] : memref<16x4x4xbf16, #tpu.memory_space<vmem>>, vector<1x4x4xbf16>
    %36 = vector.shape_cast %35 : vector<1x4x4xbf16> to vector<4x4xbf16>
    %cst_21 = arith.constant dense<0.000000e+00> : vector<64x4xf32>
    %37 = tpu.matmul %34, %36, %cst_21 {dimension_numbers = #tpu.dot_dimension_numbers<[1], [0], [0], [1], [0, 0, 1, 1], [], []>} : vector<64x4xbf16>, vector<4x4xbf16>, vector<64x4xf32> -> vector<64x4xf32>
    %38 = arith.addf %32, %37 : vector<64x4xf32>
    %39 = vector.extract_strided_slice %1 {offsets = [1, 2, 0], sizes = [8, 8, 4], strides = [1, 1, 1]} : vector<11x11x4xbf16> to vector<8x8x4xbf16>
    %40 = vector.shape_cast %39 : vector<8x8x4xbf16> to vector<64x4xbf16>
    %c6 = arith.constant 6 : index
    %c0_22 = arith.constant 0 : index
    %c0_23 = arith.constant 0 : index
    %41 = vector.load %arg2[%c6, %c0_22, %c0_23] : memref<16x4x4xbf16, #tpu.memory_space<vmem>>, vector<1x4x4xbf16>
    %42 = vector.shape_cast %41 : vector<1x4x4xbf16> to vector<4x4xbf16>
    %cst_24 = arith.constant dense<0.000000e+00> : vector<64x4xf32>
    %43 = tpu.matmul %40, %42, %cst_24 {dimension_numbers = #tpu.dot_dimension_numbers<[1], [0], [0], [1], [0, 0, 1, 1], [], []>} : vector<64x4xbf16>, vector<4x4xbf16>, vector<64x4xf32> -> vector<64x4xf32>
    %44 = arith.addf %38, %43 : vector<64x4xf32>
    %45 = vector.extract_strided_slice %1 {offsets = [1, 3, 0], sizes = [8, 8, 4], strides = [1, 1, 1]} : vector<11x11x4xbf16> to vector<8x8x4xbf16>
    %46 = vector.shape_cast %45 : vector<8x8x4xbf16> to vector<64x4xbf16>
    %c7 = arith.constant 7 : index
    %c0_25 = arith.constant 0 : index
    %c0_26 = arith.constant 0 : index
    %47 = vector.load %arg2[%c7, %c0_25, %c0_26] : memref<16x4x4xbf16, #tpu.memory_space<vmem>>, vector<1x4x4xbf16>
    %48 = vector.shape_cast %47 : vector<1x4x4xbf16> to vector<4x4xbf16>
    %cst_27 = arith.constant dense<0.000000e+00> : vector<64x4xf32>
    %49 = tpu.matmul %46, %48, %cst_27 {dimension_numbers = #tpu.dot_dimension_numbers<[1], [0], [0], [1], [0, 0, 1, 1], [], []>} : vector<64x4xbf16>, vector<4x4xbf16>, vector<64x4xf32> -> vector<64x4xf32>
    %50 = arith.addf %44, %49 : vector<64x4xf32>
    %51 = vector.extract_strided_slice %1 {offsets = [2, 0, 0], sizes = [8, 8, 4], strides = [1, 1, 1]} : vector<11x11x4xbf16> to vector<8x8x4xbf16>
    %52 = vector.shape_cast %51 : vector<8x8x4xbf16> to vector<64x4xbf16>
    %c8 = arith.constant 8 : index
    %c0_28 = arith.constant 0 : index
    %c0_29 = arith.constant 0 : index
    %53 = vector.load %arg2[%c8, %c0_28, %c0_29] : memref<16x4x4xbf16, #tpu.memory_space<vmem>>, vector<1x4x4xbf16>
    %54 = vector.shape_cast %53 : vector<1x4x4xbf16> to vector<4x4xbf16>
    %cst_30 = arith.constant dense<0.000000e+00> : vector<64x4xf32>
    %55 = tpu.matmul %52, %54, %cst_30 {dimension_numbers = #tpu.dot_dimension_numbers<[1], [0], [0], [1], [0, 0, 1, 1], [], []>} : vector<64x4xbf16>, vector<4x4xbf16>, vector<64x4xf32> -> vector<64x4xf32>
    %56 = arith.addf %50, %55 : vector<64x4xf32>
    %57 = vector.extract_strided_slice %1 {offsets = [2, 1, 0], sizes = [8, 8, 4], strides = [1, 1, 1]} : vector<11x11x4xbf16> to vector<8x8x4xbf16>
    %58 = vector.shape_cast %57 : vector<8x8x4xbf16> to vector<64x4xbf16>
    %c9 = arith.constant 9 : index
    %c0_31 = arith.constant 0 : index
    %c0_32 = arith.constant 0 : index
    %59 = vector.load %arg2[%c9, %c0_31, %c0_32] : memref<16x4x4xbf16, #tpu.memory_space<vmem>>, vector<1x4x4xbf16>
    %60 = vector.shape_cast %59 : vector<1x4x4xbf16> to vector<4x4xbf16>
    %cst_33 = arith.constant dense<0.000000e+00> : vector<64x4xf32>
    %61 = tpu.matmul %58, %60, %cst_33 {dimension_numbers = #tpu.dot_dimension_numbers<[1], [0], [0], [1], [0, 0, 1, 1], [], []>} : vector<64x4xbf16>, vector<4x4xbf16>, vector<64x4xf32> -> vector<64x4xf32>
    %62 = arith.addf %56, %61 : vector<64x4xf32>
    %63 = vector.extract_strided_slice %1 {offsets = [2, 2, 0], sizes = [8, 8, 4], strides = [1, 1, 1]} : vector<11x11x4xbf16> to vector<8x8x4xbf16>
    %64 = vector.shape_cast %63 : vector<8x8x4xbf16> to vector<64x4xbf16>
    %c10 = arith.constant 10 : index
    %c0_34 = arith.constant 0 : index
    %c0_35 = arith.constant 0 : index
    %65 = vector.load %arg2[%c10, %c0_34, %c0_35] : memref<16x4x4xbf16, #tpu.memory_space<vmem>>, vector<1x4x4xbf16>
    %66 = vector.shape_cast %65 : vector<1x4x4xbf16> to vector<4x4xbf16>
    %cst_36 = arith.constant dense<0.000000e+00> : vector<64x4xf32>
    %67 = tpu.matmul %64, %66, %cst_36 {dimension_numbers = #tpu.dot_dimension_numbers<[1], [0], [0], [1], [0, 0, 1, 1], [], []>} : vector<64x4xbf16>, vector<4x4xbf16>, vector<64x4xf32> -> vector<64x4xf32>
    %68 = arith.addf %62, %67 : vector<64x4xf32>
    %69 = vector.extract_strided_slice %1 {offsets = [2, 3, 0], sizes = [8, 8, 4], strides = [1, 1, 1]} : vector<11x11x4xbf16> to vector<8x8x4xbf16>
    %70 = vector.shape_cast %69 : vector<8x8x4xbf16> to vector<64x4xbf16>
    %c11 = arith.constant 11 : index
    %c0_37 = arith.constant 0 : index
    %c0_38 = arith.constant 0 : index
    %71 = vector.load %arg2[%c11, %c0_37, %c0_38] : memref<16x4x4xbf16, #tpu.memory_space<vmem>>, vector<1x4x4xbf16>
    %72 = vector.shape_cast %71 : vector<1x4x4xbf16> to vector<4x4xbf16>
    %cst_39 = arith.constant dense<0.000000e+00> : vector<64x4xf32>
    %73 = tpu.matmul %70, %72, %cst_39 {dimension_numbers = #tpu.dot_dimension_numbers<[1], [0], [0], [1], [0, 0, 1, 1], [], []>} : vector<64x4xbf16>, vector<4x4xbf16>, vector<64x4xf32> -> vector<64x4xf32>
    %74 = arith.addf %68, %73 : vector<64x4xf32>
    %75 = vector.extract_strided_slice %1 {offsets = [3, 0, 0], sizes = [8, 8, 4], strides = [1, 1, 1]} : vector<11x11x4xbf16> to vector<8x8x4xbf16>
    %76 = vector.shape_cast %75 : vector<8x8x4xbf16> to vector<64x4xbf16>
    %c12 = arith.constant 12 : index
    %c0_40 = arith.constant 0 : index
    %c0_41 = arith.constant 0 : index
    %77 = vector.load %arg2[%c12, %c0_40, %c0_41] : memref<16x4x4xbf16, #tpu.memory_space<vmem>>, vector<1x4x4xbf16>
    %78 = vector.shape_cast %77 : vector<1x4x4xbf16> to vector<4x4xbf16>
    %cst_42 = arith.constant dense<0.000000e+00> : vector<64x4xf32>
    %79 = tpu.matmul %76, %78, %cst_42 {dimension_numbers = #tpu.dot_dimension_numbers<[1], [0], [0], [1], [0, 0, 1, 1], [], []>} : vector<64x4xbf16>, vector<4x4xbf16>, vector<64x4xf32> -> vector<64x4xf32>
    %80 = arith.addf %74, %79 : vector<64x4xf32>
    %81 = vector.extract_strided_slice %1 {offsets = [3, 1, 0], sizes = [8, 8, 4], strides = [1, 1, 1]} : vector<11x11x4xbf16> to vector<8x8x4xbf16>
    %82 = vector.shape_cast %81 : vector<8x8x4xbf16> to vector<64x4xbf16>
    %c13 = arith.constant 13 : index
    %c0_43 = arith.constant 0 : index
    %c0_44 = arith.constant 0 : index
    %83 = vector.load %arg2[%c13, %c0_43, %c0_44] : memref<16x4x4xbf16, #tpu.memory_space<vmem>>, vector<1x4x4xbf16>
    %84 = vector.shape_cast %83 : vector<1x4x4xbf16> to vector<4x4xbf16>
    %cst_45 = arith.constant dense<0.000000e+00> : vector<64x4xf32>
    %85 = tpu.matmul %82, %84, %cst_45 {dimension_numbers = #tpu.dot_dimension_numbers<[1], [0], [0], [1], [0, 0, 1, 1], [], []>} : vector<64x4xbf16>, vector<4x4xbf16>, vector<64x4xf32> -> vector<64x4xf32>
    %86 = arith.addf %80, %85 : vector<64x4xf32>
    %87 = vector.extract_strided_slice %1 {offsets = [3, 2, 0], sizes = [8, 8, 4], strides = [1, 1, 1]} : vector<11x11x4xbf16> to vector<8x8x4xbf16>
    %88 = vector.shape_cast %87 : vector<8x8x4xbf16> to vector<64x4xbf16>
    %c14 = arith.constant 14 : index
    %c0_46 = arith.constant 0 : index
    %c0_47 = arith.constant 0 : index
    %89 = vector.load %arg2[%c14, %c0_46, %c0_47] : memref<16x4x4xbf16, #tpu.memory_space<vmem>>, vector<1x4x4xbf16>
    %90 = vector.shape_cast %89 : vector<1x4x4xbf16> to vector<4x4xbf16>
    %cst_48 = arith.constant dense<0.000000e+00> : vector<64x4xf32>
    %91 = tpu.matmul %88, %90, %cst_48 {dimension_numbers = #tpu.dot_dimension_numbers<[1], [0], [0], [1], [0, 0, 1, 1], [], []>} : vector<64x4xbf16>, vector<4x4xbf16>, vector<64x4xf32> -> vector<64x4xf32>
    %92 = arith.addf %86, %91 : vector<64x4xf32>
    %93 = vector.extract_strided_slice %1 {offsets = [3, 3, 0], sizes = [8, 8, 4], strides = [1, 1, 1]} : vector<11x11x4xbf16> to vector<8x8x4xbf16>
    %94 = vector.shape_cast %93 : vector<8x8x4xbf16> to vector<64x4xbf16>
    %c15 = arith.constant 15 : index
    %c0_49 = arith.constant 0 : index
    %c0_50 = arith.constant 0 : index
    %95 = vector.load %arg2[%c15, %c0_49, %c0_50] : memref<16x4x4xbf16, #tpu.memory_space<vmem>>, vector<1x4x4xbf16>
    %96 = vector.shape_cast %95 : vector<1x4x4xbf16> to vector<4x4xbf16>
    %cst_51 = arith.constant dense<0.000000e+00> : vector<64x4xf32>
    %97 = tpu.matmul %94, %96, %cst_51 {dimension_numbers = #tpu.dot_dimension_numbers<[1], [0], [0], [1], [0, 0, 1, 1], [], []>} : vector<64x4xbf16>, vector<4x4xbf16>, vector<64x4xf32> -> vector<64x4xf32>
    %98 = arith.addf %92, %97 : vector<64x4xf32>
    %c0_52 = arith.constant 0 : index
    %c0_53 = arith.constant 0 : index
    %99 = vector.load %arg3[%c0_52, %c0_53] : memref<1x4xf32, #tpu.memory_space<vmem>>, vector<1x4xf32>
    %100 = vector.broadcast %99 : vector<1x4xf32> to vector<64x4xf32>
    %101 = arith.addf %98, %100 : vector<64x4xf32>
    %cst_54 = arith.constant 0.000000e+00 : f32
    %102 = vector.broadcast %cst_54 : f32 to vector<64x4xf32>
    %103 = arith.maximumf %101, %102 : vector<64x4xf32>
    %104 = arith.truncf %103 : vector<64x4xf32> to vector<64x4xbf16>
    %cst_55 = arith.constant 0.000000e+00 : bf16
    %105 = vector.broadcast %cst_55 : bf16 to vector<10x10x4xbf16>
    %c0_56 = arith.constant 0 : index
    %c0_57 = arith.constant 0 : index
    %c0_58 = arith.constant 0 : index
    %106 = vector.load %arg9[%c0_56, %c0_57, %c0_58] : memref<10x10x4xbf16, #tpu.memory_space<vmem>>, vector<10x10x4xbf16>
    tpu.vector_store %arg9[%c0_56, %c0_57, %c0_58], %105 {strides = array<i32>} : memref<10x10x4xbf16, #tpu.memory_space<vmem>>, vector<10x10x4xbf16>,
    %107 = vector.shape_cast %104 : vector<64x4xbf16> to vector<8x8x4xbf16>
    %c1_59 = arith.constant 1 : index
    %c1_60 = arith.constant 1 : index
    %c0_61 = arith.constant 0 : index
    %108 = vector.load %arg9[%c1_59, %c1_60, %c0_61] : memref<10x10x4xbf16, #tpu.memory_space<vmem>>, vector<8x8x4xbf16>
    tpu.vector_store %arg9[%c1_59, %c1_60, %c0_61], %107 {strides = array<i32>} : memref<10x10x4xbf16, #tpu.memory_space<vmem>>, vector<8x8x4xbf16>,
    %cst_62 = arith.constant 0.000000e+00 : f32
    %109 = vector.broadcast %cst_62 : f32 to vector<64x16xf32>
    %c0_63 = arith.constant 0 : index
    %c0_64 = arith.constant 0 : index
    %c0_65 = arith.constant 0 : index
    %110 = vector.load %arg9[%c0_63, %c0_64, %c0_65] : memref<10x10x4xbf16, #tpu.memory_space<vmem>>, vector<8x8x4xbf16>
    %111 = vector.shape_cast %110 : vector<8x8x4xbf16> to vector<64x4xbf16>
    %c0_66 = arith.constant 0 : index
    %c0_67 = arith.constant 0 : index
    %c0_68 = arith.constant 0 : index
    %112 = vector.load %arg4[%c0_66, %c0_67, %c0_68] : memref<9x4x16xbf16, #tpu.memory_space<vmem>>, vector<1x4x16xbf16>
    %113 = vector.shape_cast %112 : vector<1x4x16xbf16> to vector<4x16xbf16>
    %cst_69 = arith.constant dense<0.000000e+00> : vector<64x16xf32>
    %114 = tpu.matmul %111, %113, %cst_69 {dimension_numbers = #tpu.dot_dimension_numbers<[1], [0], [0], [1], [0, 0, 1, 1], [], []>} : vector<64x4xbf16>, vector<4x16xbf16>, vector<64x16xf32> -> vector<64x16xf32>
    %115 = arith.addf %109, %114 : vector<64x16xf32>
    %c0_70 = arith.constant 0 : index
    %c1_71 = arith.constant 1 : index
    %c0_72 = arith.constant 0 : index
    %116 = vector.load %arg9[%c0_70, %c1_71, %c0_72] : memref<10x10x4xbf16, #tpu.memory_space<vmem>>, vector<8x8x4xbf16>
    %117 = vector.shape_cast %116 : vector<8x8x4xbf16> to vector<64x4xbf16>
    %c1_73 = arith.constant 1 : index
    %c0_74 = arith.constant 0 : index
    %c0_75 = arith.constant 0 : index
    %118 = vector.load %arg4[%c1_73, %c0_74, %c0_75] : memref<9x4x16xbf16, #tpu.memory_space<vmem>>, vector<1x4x16xbf16>
    %119 = vector.shape_cast %118 : vector<1x4x16xbf16> to vector<4x16xbf16>
    %cst_76 = arith.constant dense<0.000000e+00> : vector<64x16xf32>
    %120 = tpu.matmul %117, %119, %cst_76 {dimension_numbers = #tpu.dot_dimension_numbers<[1], [0], [0], [1], [0, 0, 1, 1], [], []>} : vector<64x4xbf16>, vector<4x16xbf16>, vector<64x16xf32> -> vector<64x16xf32>
    %121 = arith.addf %115, %120 : vector<64x16xf32>
    %c0_77 = arith.constant 0 : index
    %c2_78 = arith.constant 2 : index
    %c0_79 = arith.constant 0 : index
    %122 = vector.load %arg9[%c0_77, %c2_78, %c0_79] : memref<10x10x4xbf16, #tpu.memory_space<vmem>>, vector<8x8x4xbf16>
    %123 = vector.shape_cast %122 : vector<8x8x4xbf16> to vector<64x4xbf16>
    %c2_80 = arith.constant 2 : index
    %c0_81 = arith.constant 0 : index
    %c0_82 = arith.constant 0 : index
    %124 = vector.load %arg4[%c2_80, %c0_81, %c0_82] : memref<9x4x16xbf16, #tpu.memory_space<vmem>>, vector<1x4x16xbf16>
    %125 = vector.shape_cast %124 : vector<1x4x16xbf16> to vector<4x16xbf16>
    %cst_83 = arith.constant dense<0.000000e+00> : vector<64x16xf32>
    %126 = tpu.matmul %123, %125, %cst_83 {dimension_numbers = #tpu.dot_dimension_numbers<[1], [0], [0], [1], [0, 0, 1, 1], [], []>} : vector<64x4xbf16>, vector<4x16xbf16>, vector<64x16xf32> -> vector<64x16xf32>
    %127 = arith.addf %121, %126 : vector<64x16xf32>
    %c1_84 = arith.constant 1 : index
    %c0_85 = arith.constant 0 : index
    %c0_86 = arith.constant 0 : index
    %128 = vector.load %arg9[%c1_84, %c0_85, %c0_86] : memref<10x10x4xbf16, #tpu.memory_space<vmem>>, vector<8x8x4xbf16>
    %129 = vector.shape_cast %128 : vector<8x8x4xbf16> to vector<64x4xbf16>
    %c3_87 = arith.constant 3 : index
    %c0_88 = arith.constant 0 : index
    %c0_89 = arith.constant 0 : index
    %130 = vector.load %arg4[%c3_87, %c0_88, %c0_89] : memref<9x4x16xbf16, #tpu.memory_space<vmem>>, vector<1x4x16xbf16>
    %131 = vector.shape_cast %130 : vector<1x4x16xbf16> to vector<4x16xbf16>
    %cst_90 = arith.constant dense<0.000000e+00> : vector<64x16xf32>
    %132 = tpu.matmul %129, %131, %cst_90 {dimension_numbers = #tpu.dot_dimension_numbers<[1], [0], [0], [1], [0, 0, 1, 1], [], []>} : vector<64x4xbf16>, vector<4x16xbf16>, vector<64x16xf32> -> vector<64x16xf32>
    %133 = arith.addf %127, %132 : vector<64x16xf32>
    %c1_91 = arith.constant 1 : index
    %c1_92 = arith.constant 1 : index
    %c0_93 = arith.constant 0 : index
    %134 = vector.load %arg9[%c1_91, %c1_92, %c0_93] : memref<10x10x4xbf16, #tpu.memory_space<vmem>>, vector<8x8x4xbf16>
    %135 = vector.shape_cast %134 : vector<8x8x4xbf16> to vector<64x4xbf16>
    %c4_94 = arith.constant 4 : index
    %c0_95 = arith.constant 0 : index
    %c0_96 = arith.constant 0 : index
    %136 = vector.load %arg4[%c4_94, %c0_95, %c0_96] : memref<9x4x16xbf16, #tpu.memory_space<vmem>>, vector<1x4x16xbf16>
    %137 = vector.shape_cast %136 : vector<1x4x16xbf16> to vector<4x16xbf16>
    %cst_97 = arith.constant dense<0.000000e+00> : vector<64x16xf32>
    %138 = tpu.matmul %135, %137, %cst_97 {dimension_numbers = #tpu.dot_dimension_numbers<[1], [0], [0], [1], [0, 0, 1, 1], [], []>} : vector<64x4xbf16>, vector<4x16xbf16>, vector<64x16xf32> -> vector<64x16xf32>
    %139 = arith.addf %133, %138 : vector<64x16xf32>
    %c1_98 = arith.constant 1 : index
    %c2_99 = arith.constant 2 : index
    %c0_100 = arith.constant 0 : index
    %140 = vector.load %arg9[%c1_98, %c2_99, %c0_100] : memref<10x10x4xbf16, #tpu.memory_space<vmem>>, vector<8x8x4xbf16>
    %141 = vector.shape_cast %140 : vector<8x8x4xbf16> to vector<64x4xbf16>
    %c5_101 = arith.constant 5 : index
    %c0_102 = arith.constant 0 : index
    %c0_103 = arith.constant 0 : index
    %142 = vector.load %arg4[%c5_101, %c0_102, %c0_103] : memref<9x4x16xbf16, #tpu.memory_space<vmem>>, vector<1x4x16xbf16>
    %143 = vector.shape_cast %142 : vector<1x4x16xbf16> to vector<4x16xbf16>
    %cst_104 = arith.constant dense<0.000000e+00> : vector<64x16xf32>
    %144 = tpu.matmul %141, %143, %cst_104 {dimension_numbers = #tpu.dot_dimension_numbers<[1], [0], [0], [1], [0, 0, 1, 1], [], []>} : vector<64x4xbf16>, vector<4x16xbf16>, vector<64x16xf32> -> vector<64x16xf32>
    %145 = arith.addf %139, %144 : vector<64x16xf32>
    %c2_105 = arith.constant 2 : index
    %c0_106 = arith.constant 0 : index
    %c0_107 = arith.constant 0 : index
    %146 = vector.load %arg9[%c2_105, %c0_106, %c0_107] : memref<10x10x4xbf16, #tpu.memory_space<vmem>>, vector<8x8x4xbf16>
    %147 = vector.shape_cast %146 : vector<8x8x4xbf16> to vector<64x4xbf16>
    %c6_108 = arith.constant 6 : index
    %c0_109 = arith.constant 0 : index
    %c0_110 = arith.constant 0 : index
    %148 = vector.load %arg4[%c6_108, %c0_109, %c0_110] : memref<9x4x16xbf16, #tpu.memory_space<vmem>>, vector<1x4x16xbf16>
    %149 = vector.shape_cast %148 : vector<1x4x16xbf16> to vector<4x16xbf16>
    %cst_111 = arith.constant dense<0.000000e+00> : vector<64x16xf32>
    %150 = tpu.matmul %147, %149, %cst_111 {dimension_numbers = #tpu.dot_dimension_numbers<[1], [0], [0], [1], [0, 0, 1, 1], [], []>} : vector<64x4xbf16>, vector<4x16xbf16>, vector<64x16xf32> -> vector<64x16xf32>
    %151 = arith.addf %145, %150 : vector<64x16xf32>
    %c2_112 = arith.constant 2 : index
    %c1_113 = arith.constant 1 : index
    %c0_114 = arith.constant 0 : index
    %152 = vector.load %arg9[%c2_112, %c1_113, %c0_114] : memref<10x10x4xbf16, #tpu.memory_space<vmem>>, vector<8x8x4xbf16>
    %153 = vector.shape_cast %152 : vector<8x8x4xbf16> to vector<64x4xbf16>
    %c7_115 = arith.constant 7 : index
    %c0_116 = arith.constant 0 : index
    %c0_117 = arith.constant 0 : index
    %154 = vector.load %arg4[%c7_115, %c0_116, %c0_117] : memref<9x4x16xbf16, #tpu.memory_space<vmem>>, vector<1x4x16xbf16>
    %155 = vector.shape_cast %154 : vector<1x4x16xbf16> to vector<4x16xbf16>
    %cst_118 = arith.constant dense<0.000000e+00> : vector<64x16xf32>
    %156 = tpu.matmul %153, %155, %cst_118 {dimension_numbers = #tpu.dot_dimension_numbers<[1], [0], [0], [1], [0, 0, 1, 1], [], []>} : vector<64x4xbf16>, vector<4x16xbf16>, vector<64x16xf32> -> vector<64x16xf32>
    %157 = arith.addf %151, %156 : vector<64x16xf32>
    %c2_119 = arith.constant 2 : index
    %c2_120 = arith.constant 2 : index
    %c0_121 = arith.constant 0 : index
    %158 = vector.load %arg9[%c2_119, %c2_120, %c0_121] : memref<10x10x4xbf16, #tpu.memory_space<vmem>>, vector<8x8x4xbf16>
    %159 = vector.shape_cast %158 : vector<8x8x4xbf16> to vector<64x4xbf16>
    %c8_122 = arith.constant 8 : index
    %c0_123 = arith.constant 0 : index
    %c0_124 = arith.constant 0 : index
    %160 = vector.load %arg4[%c8_122, %c0_123, %c0_124] : memref<9x4x16xbf16, #tpu.memory_space<vmem>>, vector<1x4x16xbf16>
    %161 = vector.shape_cast %160 : vector<1x4x16xbf16> to vector<4x16xbf16>
    %cst_125 = arith.constant dense<0.000000e+00> : vector<64x16xf32>
    %162 = tpu.matmul %159, %161, %cst_125 {dimension_numbers = #tpu.dot_dimension_numbers<[1], [0], [0], [1], [0, 0, 1, 1], [], []>} : vector<64x4xbf16>, vector<4x16xbf16>, vector<64x16xf32> -> vector<64x16xf32>
    %163 = arith.addf %157, %162 : vector<64x16xf32>
    %c0_126 = arith.constant 0 : index
    %c0_127 = arith.constant 0 : index
    %164 = vector.load %arg5[%c0_126, %c0_127] : memref<1x16xf32, #tpu.memory_space<vmem>>, vector<1x16xf32>
    %165 = vector.broadcast %164 : vector<1x16xf32> to vector<64x16xf32>
    %166 = arith.addf %163, %165 : vector<64x16xf32>
    %167 = arith.truncf %166 : vector<64x16xf32> to vector<64x16xbf16>
    %c0_128 = arith.constant 0 : index
    %c0_129 = arith.constant 0 : index
    %c0_130 = arith.constant 0 : index
    %168 = vector.load %arg6[%c0_128, %c0_129, %c0_130] : memref<1x64x16xbf16, #tpu.memory_space<vmem>>, vector<1x64x16xbf16>
    %169 = vector.shape_cast %168 : vector<1x64x16xbf16> to vector<64x16xbf16>
    %170 = vector.shape_cast %167 : vector<64x16xbf16> to vector<1x64x16xbf16>
    tpu.vector_store %arg6[%c0_128, %c0_129, %c0_130], %170 {strides = array<i32>} : memref<1x64x16xbf16, #tpu.memory_space<vmem>>, vector<1x64x16xbf16>,
    %cst_131 = arith.constant dense<0.000000e+00> : vector<16xf32>
    %171 = vector.multi_reduction <add>, %166, %cst_131 [0] : vector<64x16xf32> to vector<16xf32>
    %172 = vector.shape_cast %171 : vector<16xf32> to vector<1x16xf32>
    %173 = vector.shape_cast %172 : vector<1x16xf32> to vector<1x1x16xf32>
    %c0_132 = arith.constant 0 : index
    %c0_133 = arith.constant 0 : index
    %c0_134 = arith.constant 0 : index
    %174 = vector.load %arg7[%c0_132, %c0_133, %c0_134] : memref<1x1x16xf32, #tpu.memory_space<vmem>>, vector<1x1x16xf32>
    tpu.vector_store %arg7[%c0_132, %c0_133, %c0_134], %173 {strides = array<i32>} : memref<1x1x16xf32, #tpu.memory_space<vmem>>, vector<1x1x16xf32>,
    %175 = arith.mulf %166, %166 : vector<64x16xf32>
    %cst_135 = arith.constant dense<0.000000e+00> : vector<16xf32>
    %176 = vector.multi_reduction <add>, %175, %cst_135 [0] : vector<64x16xf32> to vector<16xf32>
    %177 = vector.shape_cast %176 : vector<16xf32> to vector<1x16xf32>
    %178 = vector.shape_cast %177 : vector<1x16xf32> to vector<1x1x16xf32>
    %c0_136 = arith.constant 0 : index
    %c0_137 = arith.constant 0 : index
    %c0_138 = arith.constant 0 : index
    %179 = vector.load %arg8[%c0_136, %c0_137, %c0_138] : memref<1x1x16xf32, #tpu.memory_space<vmem>>, vector<1x1x16xf32>
    tpu.vector_store %arg8[%c0_136, %c0_137, %c0_138], %178 {strides = array<i32>} : memref<1x1x16xf32, #tpu.memory_space<vmem>>, vector<1x1x16xf32>,
    return
  }
  func.func @transform_0(%arg0: i32) -> (i32, i32, i32, i32) {
    %c0_i32 = arith.constant 0 : i32
    %c0_i32_0 = arith.constant 0 : i32
    %c0_i32_1 = arith.constant 0 : i32
    %c0_i32_2 = arith.constant 0 : i32
    return %arg0, %c0_i32, %c0_i32_0, %c0_i32_1 : i32, i32, i32, i32
  }
  func.func @transform_1(%arg0: i32) -> (i32, i32, i32) {
    %c0_i32 = arith.constant 0 : i32
    %c0_i32_0 = arith.constant 0 : i32
    %c0_i32_1 = arith.constant 0 : i32
    %c0_i32_2 = arith.constant 0 : i32
    return %c0_i32, %c0_i32_0, %c0_i32_1 : i32, i32, i32
  }
  func.func @transform_2(%arg0: i32) -> (i32, i32) {
    %c0_i32 = arith.constant 0 : i32
    %c0_i32_0 = arith.constant 0 : i32
    %c0_i32_1 = arith.constant 0 : i32
    return %c0_i32, %c0_i32_0 : i32, i32
  }
  func.func @transform_3(%arg0: i32) -> (i32, i32, i32) {
    %c0_i32 = arith.constant 0 : i32
    %c0_i32_0 = arith.constant 0 : i32
    %c0_i32_1 = arith.constant 0 : i32
    %c0_i32_2 = arith.constant 0 : i32
    return %c0_i32, %c0_i32_0, %c0_i32_1 : i32, i32, i32
  }
  func.func @transform_4(%arg0: i32) -> (i32, i32) {
    %c0_i32 = arith.constant 0 : i32
    %c0_i32_0 = arith.constant 0 : i32
    %c0_i32_1 = arith.constant 0 : i32
    return %c0_i32, %c0_i32_0 : i32, i32
  }
  func.func @transform_5(%arg0: i32) -> (i32, i32, i32) {
    %c0_i32 = arith.constant 0 : i32
    %c0_i32_0 = arith.constant 0 : i32
    %c0_i32_1 = arith.constant 0 : i32
    return %arg0, %c0_i32, %c0_i32_0 : i32, i32, i32
  }
  func.func @transform_6(%arg0: i32) -> (i32, i32, i32) {
    %c0_i32 = arith.constant 0 : i32
    %c0_i32_0 = arith.constant 0 : i32
    %c0_i32_1 = arith.constant 0 : i32
    return %arg0, %c0_i32, %c0_i32_0 : i32, i32, i32
  }
  func.func @transform_7(%arg0: i32) -> (i32, i32, i32) {
    %c0_i32 = arith.constant 0 : i32
    %c0_i32_0 = arith.constant 0 : i32
    %c0_i32_1 = arith.constant 0 : i32
    return %arg0, %c0_i32, %c0_i32_0 : i32, i32, i32
  }
}

</mosaic_0001>

<bundles_post_ra>
// kernel: csa_innermost_forward.1
= control target key start
LH: loop header
LB: loop body
LE: loop exit
PB: predicated region body
PF: predicated region fallthrough
CT: control target
= control target key end

     0   :  { %s3355_s24 = smov 0   ;;  %s4662_s0 = inlined_call_operand.vmem [shape: bf16[2,11,11,4], index: 0, kind: input, shape index: {}]   ;;  %s4663_s1 = inlined_call_operand.vmem [shape: bf16[16,4,4], index: 1, kind: input, shape index: {}]   ;;  %s4664_s2 = inlined_call_operand.vmem [shape: f32[1,4], index: 2, kind: input, shape index: {}]   ;;  %s4665_s3 = inlined_call_operand.vmem [shape: bf16[9,4,16], index: 3, kind: input, shape index: {}]   ;;  %s4666_s4 = inlined_call_operand.vmem [shape: f32[1,16], index: 4, kind: input, shape index: {}]   ;;  %s4667_s5 = inlined_call_operand.vmem [shape: bf16[2,64,16], index: 5, kind: output, shape index: {0}]   ;;  %s4668_s6 = inlined_call_operand.vmem [shape: f32[2,1,16], index: 6, kind: output, shape index: {1}]   ;;  %s4669_s7 = inlined_call_operand.vmem [shape: f32[2,1,16], index: 7, kind: output, shape index: {2}]  }
   0x1 LB: > { %s3062_s25 = sadd.s32 4294967295, %s3312_s24   ;;  %p3066_p0 = scmp.ge.s32.totalorder %s3312_s24, 1  ;;  %s3312_s24 = sphi %s3355_s24, %s18_s24  }
   0x2   : > { %p242_p1 = scmp.lt.s32.totalorder %s3312_s24, 3 }
   0x4   : > { %p243_p2 = pnand %p3066_p0, %p242_p1 }
   0x5   : > { %p280_p3 = scmp.lt.s32.totalorder (!%p243_p2), %s3062_s25, 1 }
   0x6   : > { %246 = sbr.rel (%p243_p2) target bundleno = 753 (0x2f1), region = 40 }
   0xb   : > { %v3070_v0 = vld [vmem:[%s4663_s1 + $0x2] sm:$0x3]  ;;  %vm462_vm0 = vcmask 1041408   ;;  %v3087_v2 = vld [vmem:[%s4663_s1 + $0x4] sm:$0x3]  ;;  %s4692_s25 = smov (!%p280_p3, %s3062_s25), 1 }
   0xc   : > { %v464_v1 = vsel %vm462_vm0, %v3070_v0, 0  ;;  %v629_v3 = vsel %vm462_vm0, %v3087_v2, 0  ;;  %v3092_v4 = vld [vmem:[%s4663_s1 + $0x6] sm:$0x3]  ;;  %v319_v5 = vld [vmem:[%s4663_s1] sm:$0x3]  ;;  %s292_s27 = scalar_lea.vmem %s4668_s6, %s4692_s25  ;;  %s295_s30 = scalar_lea.vmem %s4669_s7, %s4692_s25 }
   0xd   : > { %3291 = vmatpush.bf16.msra.mxu1 %v464_v1  ;;  %3292 = vmatpush.bf16.msra.mxu2 %v464_v1  ;;  %v778_v6 = vsel %vm462_vm0, %v3092_v4, 0  ;;  %v528_v7 = vsel %vm462_vm0, %v319_v5, 0  ;;  %s3294_s11 = smul.u32 88, %s4692_s25  ;;  %vm320_vm1 = vsmask.f32 3328  ;;  %vm449_vm3 = vcmask 31744  }
   0xe   : > { %3293 = vmatpush.bf16.msra.mxu3 %v464_v1  ;;  %473 = vmatpush.bf16.msra.mxu0 %v464_v1  ;;  %vm321_vm2 = vsmask.f32 7440  ;;  %vm567_vm5 = vcmask 1042432   ;;  %vm568_vm6 = vcmask 1046532   ;;  %vm668_vm8 = vsmask.f32 2304 }
   0xf   : > { %s3385_s14 = scalar_lea.vmem %s4662_s0, %s3294_s11  ;;  %vm3439_vm4 = vmor %vm320_vm1, %vm321_vm2  ;;  %vm669_vm9 = vsmask.f32 6416  ;;  %vm1547_vm11 = vcmask 27648   ;;  %vm1549_vm12 = vcmask 24576   ;;  %vm1651_vm13 = vsmask.f32 7938 }
  0x10   : > { %v3388_v8 = vld [vmem:[%s3385_s14 + $0x10] sm:$0xf]  ;;  %v3391_v9 = vld [vmem:[%s3385_s14 + $0x14] sm:$0x3]  ;;  %v3394_v10 = vld [vmem:[%s3385_s14 + $0x18] sm:$0xf] }
  0x11   : > { %638 = vmatpush.bf16.msrb.mxu2 %v629_v3  ;;  %537 = vmatpush.bf16.msrb.mxu1 %v528_v7  ;;  %v3397_v11 = vld [vmem:[%s3385_s14 + $0x1c] sm:$0x3]  ;;  %v352_v12 = vshrl.u32 %v3388_v8, 16  ;;  %v355_v13 = vshll.u32 %v3388_v8, 16  ;;  %v361_v14 = vshll.u32 %v3391_v9, 16  ;;  %v366_v15 = vshrl.u32 %v3394_v10, 16  ;;  %vm3541_vm7 = vmor %vm567_vm5, %vm568_vm6 }
  0x12   : > { %787 = vmatpush.bf16.msrb.mxu3 %v778_v6  ;;  %v369_v16 = vshll.u32 %v3394_v10, 16  ;;  %v375_v17 = vshll.u32 %v3397_v11, 16  ;;  %v3406_v18 = vld [vmem:[%s3385_s14 + $0x20] sm:$0xf]  ;;  %v3409_v19 = vld [vmem:[%s3385_s14 + $0x24] sm:$0x3]  ;;  %vm3588_vm10 = vmor %vm668_vm8, %vm669_vm9 }
  0x13   : > { %v354_v20 = vrot.slane %v352_v12, 4  ;;  %v357_v21 = vrot.slane %v355_v13, 5  ;;  %v363_v22 = vrot.slane %v361_v14, 5  ;;  %v368_v23 = vrot.slane %v366_v15, 4  ;;  %v3420_v24 = vld [vmem:[%s3385_s14 + $0x28] sm:$0xf]  ;;  %vm4218_vm15 = vmand %vm1547_vm11, %vm1651_vm13 }
  0x14   : > { %v371_v25 = vrot.slane %v369_v16, 5  ;;  %v377_v26 = vrot.slane %v375_v17, 5  ;;  %v3427_v27 = vld [vmem:[%s3385_s14 + $0x2c] sm:$0x3]  ;;  %v380_v28 = vshrl.u32 %v3406_v18, 16  ;;  %v383_v29 = vshll.u32 %v3406_v18, 16 }
  0x15   : > { %v358_v30 = vor.u32 %v357_v21, %v354_v20  ;;  %v389_v31 = vshll.u32 %v3409_v19, 16  ;;  %v394_v32 = vshrl.u32 %v3420_v24, 16  ;;  %v397_v33 = vshll.u32 %v3420_v24, 16  ;;  %v3435_v34 = vld [vmem:[%s3385_s14 + $0x30] sm:$0xf]  ;;  %s3278_s19 = sshll.u32 %s4692_s25, 5 }
  0x16   : > { %v372_v36 = vor.u32 %v371_v25, %v368_v23  ;;  %v382_v37 = vrot.slane %v380_v28, 4  ;;  %v385_v38 = vrot.slane %v383_v29, 5  ;;  %v4673_v39 = vshll.u32 %v3427_v27, 16  ;;  %v3449_v40 = vld [vmem:[%s3385_s14 + $0x34] sm:$0x3]  ;;  %s4590_s22 = scalar_lea.vmem %s4667_s5, %s3278_s19 }
  0x17   : > { %v359_v41 = vrot.slane %v358_v30, 4  ;;  %v391_v42 = vrot.slane %v389_v31, 5  ;;  %v396_v43 = vrot.slane %v394_v32, 4  ;;  %v399_v44 = vrot.slane %v397_v33, 5  ;;  %v3463_v51 = vld [vmem:[%s3385_s14 + $0x38] sm:$0xf] }
  0x18   : > { %v373_v45 = vrot.slane %v372_v36, 4  ;;  %v386_v46 = vor.u32 %v385_v38, %v382_v37  ;;  %v405_v47 = vrot.slane %v4673_v39, 5  ;;  %v408_v48 = vshrl.u32 %v3435_v34, 16  ;;  %v3466_v52 = vld [vmem:[%s3385_s14 + $0x3c] sm:$0x3] }
  0x19   : > { %v364_v49 = vsel %vm3439_vm4, %v359_v41, %v363_v22  ;;  %v400_v50 = vor.u32 %v399_v44, %v396_v43  ;;  %v411_v53 = vshll.u32 %v3435_v34, 16  ;;  %v4674_v54 = vshll.u32 %v3449_v40, 16  ;;  %v3483_v63 = vld [vmem:[%s3385_s14] sm:$0xf]  ;;  %v3491_v4 = vld [vmem:[%s3385_s14 + $0x4] sm:$0x3] }
  0x1a   : > { %v378_v55 = vsel %vm3439_vm4, %v373_v45, %v377_v26  ;;  %v3472_v56 = vunpack.c.l.b16 %v364_v49  ;;  %v387_v57 = vrot.slane %v386_v46, 4  ;;  %v410_v58 = vrot.slane %v408_v48, 4  ;;  %v3502_v21 = vld [vmem:[%s3385_s14 + $0x8] sm:$0xf]  ;;  %v300_v43 = vld [vmem:[%s3385_s14 + $0xc] sm:$0x3] }
  0x1b   : > { %v3476_v59 = vunpack.c.l.b16 %v378_v55  ;;  %v401_v60 = vrot.slane %v400_v50, 4  ;;  %v413_v61 = vrot.slane %v411_v53, 5  ;;  %v419_v62 = vrot.slane %v4674_v54, 5  ;;  %v3097_v39 = vld [vmem:[%s4663_s1 + $0x8] sm:$0x3] }
  0x1c   : > { %v392_v0 = vsel %vm3439_vm4, %v387_v57, %v391_v42  ;;  %v4672_v1 = vshrl.u32 %v3463_v51, 16  ;;  %v4671_v2 = vshll.u32 %v3463_v51, 16  ;;  %v4670_v3 = vshll.u32 %v3466_v52, 16 }
  0x1d   : > { %v3495_v5 = vpack.c.b16 %v3476_v59, %v3472_v56  ;;  %v406_v6 = vsel %vm3439_vm4, %v401_v60, %v405_v47  ;;  %v3499_v7 = vunpack.c.l.b16 %v392_v0  ;;  %v414_v20 = vor.u32 %v413_v61, %v410_v58 }
  0x1e   : > { %v3504_v22 = vunpack.c.l.b16 %v406_v6  ;;  %v424_v23 = vrot.slane %v4672_v1, 4  ;;  %v427_v25 = vrot.slane %v4671_v2, 5  ;;  %v433_v26 = vrot.slane %v4670_v3, 5 }
  0x1f   : > { %3072 = vmatmul.msk.bf16.vlgmr.msra.gmra.mxu1 %vm449_vm3, %v3495_v5  ;;  %v415_v30 = vrot.slane %v414_v20, 4  ;;  %v324_v36 = vshrl.u32 %v3483_v63, 16  ;;  %v327_v37 = vshll.u32 %v3483_v63, 16  ;;  %v333_v38 = vshll.u32 %v3491_v4, 16 }
  0x20   : > { %v3519_v41 = vpack.c.b16 %v3504_v22, %v3499_v7  ;;  %v428_v42 = vor.u32 %v427_v25, %v424_v23  ;;  %v338_v44 = vshrl.u32 %v3502_v21, 16  ;;  %v341_v45 = vshll.u32 %v3502_v21, 16 }
  0x21   : > { %v420_v46 = vsel %vm3439_vm4, %v415_v30, %v419_v62  ;;  %v326_v47 = vrot.slane %v324_v36, 4  ;;  %v329_v49 = vrot.slane %v327_v37, 5  ;;  %v335_v50 = vrot.slane %v333_v38, 5 }
  0x22   : > { %3073 = vmatmul.msk.bf16.vlgmr.msra.gmra.mxu2 %vm449_vm3, %v3519_v41  ;;  %v429_v55 = vrot.slane %v428_v42, 4  ;;  %v3528_v57 = vunpack.c.l.b16 %v420_v46  ;;  %v340_v58 = vrot.slane %v338_v44, 4  ;;  %v343_v60 = vrot.slane %v341_v45, 5 }
  0x23   : > { %v330_v61 = vor.u32 %v329_v49, %v326_v47  ;;  %v347_v0 = vshll.u32 %v300_v43, 16  ;;  %v3530_v6 = vrot.slane %v333_v38, 6  ;;  %v503_v20 = vunpack.c.l.b16 %v3483_v63 }
  0x24   : > { %v434_v62 = vsel %vm3439_vm4, %v429_v55, %v433_v26  ;;  %v344_v23 = vor.u32 %v343_v60, %v340_v58  ;;  %v504_v25 = vunpack.c.l.b16 %v3502_v21  ;;  %v3079_v30 = vrot.slane %v3483_v63, 9 }
  0x25   : > { %v3537_v3 = vunpack.c.l.b16 %v434_v62  ;;  %v331_v42 = vrot.slane %v330_v61, 4  ;;  %v349_v46 = vrot.slane %v347_v0, 5  ;;  %v688_v2 = vrot.slane %v347_v0, 6 }
  0x26   : > { %v345_v47 = vrot.slane %v344_v23, 4  ;;  %v511_v26 = vpack.c.b16 %v504_v25, %v503_v20  ;;  %v572_v49 = vrot.slane %v3491_v4, 5  ;;  %v3080_v55 = vrot.slane %v3502_v21, 9 }
  0x27   : > { %v3551_v63 = vpack.c.b16 %v3537_v3, %v3528_v57  ;;  %v336_v58 = vsel %vm3439_vm4, %v331_v42, %v335_v50  ;;  %v576_v60 = vrot.slane %v300_v43, 5  ;;  %v671_v42 = vrot.slane %v324_v36, 5 }
  0x28   : > { %v350_v61 = vsel %vm3439_vm4, %v345_v47, %v349_v46  ;;  %v437_v0 = vunpack.c.l.b16 %v336_v58  ;;  %v573_v20 = vsel %vm3541_vm7, %v3079_v30, %v572_v49  ;;  %v3108_v46 = vld [vmem:[%s4663_s1 + $0xc] sm:$0x3]  ;;  %v3113_v30 = vld [vmem:[%s4663_s1 + $0xe] sm:$0x3]  ;;  %v672_v49 = vrot.slane %v327_v37, 6 }
  0x29   : > { %3074 = vmatmul.msk.bf16.vlgmr.msra.gmra.mxu3 %vm449_vm3, %v3551_v63  ;;  %v3561_v62 = vunpack.c.l.b16 %v350_v61  ;;  %v3565_v23 = vsel %vm3541_vm7, %v3080_v55, %v576_v60  ;;  %v604_v50 = vunpack.c.l.b16 %v573_v20  ;;  %v675_v58 = vshrl.u32 %v3491_v4, 16  ;;  %v3102_v55 = vld [vmem:[%s4663_s1 + $0xa] sm:$0x3] }
  0x2a   : > { %v605_v47 = vunpack.c.l.b16 %v3565_v23  ;;  %v681_v61 = vrot.slane %v338_v44, 5  ;;  %v682_v20 = vrot.slane %v341_v45, 6  ;;  %v685_v1 = vshrl.u32 %v300_v43, 16 }
  0x2b   : > { %v445_v36 = vpack.c.b16 %v3561_v62, %v437_v0  ;;  %v673_v54 = vor.u32 %v672_v49, %v671_v42  ;;  %v677_v37 = vrot.slane %v675_v58, 5  ;;  %v975_v4 = vsel %vm462_vm0, %v3108_v46, 0 }
  0x2c   : > { %v683_v0 = vor.u32 %v682_v20, %v681_v61  ;;  %v687_v60 = vrot.slane %v685_v1, 5  ;;  %984 = vmatpush.bf16.msra.mxu2 %v975_v4  ;;  %v1044_v43 = vsel %vm462_vm0, %v3113_v30, 0  ;;  %v911_v45 = vsel %vm462_vm0, %v3102_v55, 0 }
  0x2d   : > { %3071 = vmatmul.msk.bf16.vlgmr.msra.gmra.mxu0 %vm449_vm3, %v445_v36  ;;  %v612_v42 = vpack.c.b16 %v605_v47, %v604_v50  ;;  %v674_v49 = vrot.slane %v673_v54, 4  ;;  %v679_v46 = vor.u32 %v3530_v6, %v677_v37  ;;  %1053 = vmatpush.bf16.msra.mxu3 %v1044_v43  ;;  %v838_v58 = vsel %vm462_vm0, %v3097_v39, 0 }
  0x2e   : > { %920 = vmatpush.bf16.msra.mxu1 %v911_v45  ;;  %v684_v36 = vrot.slane %v683_v0, 4  ;;  %v689_v61 = vor.u32 %v688_v2, %v687_v60  ;;  %847 = vmatpush.bf16.msrb.mxu0 %v838_v58  ;;  %v3081_v1 = vrot.slane %v3388_v8, 9  ;;  %v580_v55 = vrot.slane %v3391_v9, 5 }
  0x2f   : > { %3075 = vmatmul.msk.bf16.vlgmr.msrb.gmra.mxu1 %vm449_vm3, %v511_v26  ;;  %v680_v30 = vsel %vm3588_vm10, %v674_v49, %v679_v46  ;;  %v3082_v54 = vrot.slane %v3394_v10, 9  ;;  %v584_v39 = vrot.slane %v3397_v11, 5  ;;  %v691_v26 = vrot.slane %v352_v12, 5 }
  0x30   : > { %v3606_v6 = vsel %vm3588_vm10, %v684_v36, %v689_v61  ;;  %v753_v50 = vunpack.c.l.b16 %v680_v30  ;;  %v692_v60 = vrot.slane %v355_v13, 6  ;;  %v505_v20 = vunpack.c.l.b16 %v3388_v8 }
  0x31   : > { %v754_v2 = vunpack.c.l.b16 %v3606_v6  ;;  %v3618_v37 = vsel %vm3541_vm7, %v3081_v1, %v580_v55  ;;  %v695_v4 = vshrl.u32 %v3391_v9, 16  ;;  %v3625_v43 = vsel %vm3541_vm7, %v3082_v54, %v584_v39 }
  0x32   : > { %3088 = vmatmul.msk.bf16.vlgmr.msrb.gmra.mxu2 %vm449_vm3, %v612_v42  ;;  %v698_v12 = vrot.slane %v361_v14, 6  ;;  %v701_v13 = vrot.slane %v366_v15, 5  ;;  %v693_v8 = vor.u32 %v692_v60, %v691_v26  ;;  %v702_v42 = vrot.slane %v369_v16, 6 }
  0x33   : > { %v761_v0 = vpack.c.b16 %v754_v2, %v753_v50  ;;  %v697_v45 = vrot.slane %v695_v4, 5  ;;  %v705_v49 = vshrl.u32 %v3397_v11, 16  ;;  %v708_v46 = vrot.slane %v375_v17, 6 }
  0x34   : > { %v506_v58 = vunpack.c.l.b16 %v3394_v10  ;;  %v703_v36 = vor.u32 %v702_v42, %v701_v13  ;;  %v821_v9 = vpack.c.b16 %v505_v20, %v504_v25  ;;  %v606_v14 = vunpack.c.l.b16 %v3618_v37 }
  0x35   : > { %v707_v61 = vrot.slane %v705_v49, 5  ;;  %v607_v15 = vunpack.c.l.b16 %v3625_v43  ;;  %v694_v1 = vrot.slane %v693_v8, 4  ;;  %v699_v16 = vor.u32 %v698_v12, %v697_v45  ;;  %v314_v43 = vld [vmem:[%s3385_s14 + $0x44] sm:$0x3] }
  0x36   : > { %v704_v30 = vrot.slane %v703_v36, 4  ;;  %v3642_v54 = vpack.c.b16 %v506_v58, %v505_v20  ;;  %v3083_v21 = vrot.slane %v3406_v18, 9  ;;  %v588_v25 = vrot.slane %v3409_v19, 5 }
  0x37   : > { %v709_v55 = vor.u32 %v708_v46, %v707_v61  ;;  %v3649_v10 = vpack.c.b16 %v607_v15, %v606_v14  ;;  %v3653_v11 = vsel %vm3588_vm10, %v694_v1, %v699_v16  ;;  %v3084_v50 = vrot.slane %v3420_v24, 9 }
  0x38   : > { %v592_v39 = vrot.slane %v3427_v27, 5  ;;  %v711_v26 = vrot.slane %v380_v28, 5  ;;  %v712_v60 = vrot.slane %v383_v29, 6  ;;  %v755_v20 = vunpack.c.l.b16 %v3653_v11 }
  0x39   : > { %3093 = vmatmul.msk.bf16.vlgmr.msrb.gmra.mxu3 %vm449_vm3, %v761_v0  ;;  %v3657_v17 = vsel %vm3588_vm10, %v704_v30, %v709_v55  ;;  %v715_v0 = vshrl.u32 %v3409_v19, 16  ;;  %v721_v12 = vrot.slane %v394_v32, 5  ;;  %v722_v13 = vrot.slane %v397_v33, 6 }
  0x3a   : > { %v756_v4 = vunpack.c.l.b16 %v3657_v17  ;;  %v507_v28 = vunpack.c.l.b16 %v3406_v18  ;;  %v3681_v29 = vsel %vm3541_vm7, %v3083_v21, %v588_v25  ;;  %v3685_v8 = vsel %vm3541_vm7, %v3084_v50, %v592_v39 }
  0x3b   : > { %v725_v45 = vshrl.u32 %v3427_v27, 16  ;;  %v713_v42 = vor.u32 %v712_v60, %v711_v26  ;;  %v718_v32 = vrot.slane %v389_v31, 6  ;;  %v731_v33 = vrot.slane %v408_v48, 5 }
  0x3c   : > { %v732_v18 = vrot.slane %v411_v53, 6  ;;  %v3698_v49 = vpack.c.b16 %v756_v4, %v755_v20  ;;  %v717_v46 = vrot.slane %v715_v0, 5  ;;  %v735_v36 = vshrl.u32 %v3449_v40, 16 }
  0x3d   : > { %3098 = vmatmul.msk.bf16.vlgmr.msrb.gmra.mxu0 %vm449_vm3, %v821_v9  ;;  %v4681_v61 = vshll.u32 %v3449_v40, 16  ;;  %v723_v19 = vor.u32 %v722_v13, %v721_v12  ;;  %v4682_v31 = vshll.u32 %v3427_v27, 16  ;;  %v4683_v16 = vshrl.u32 %v3463_v51, 16 }
  0x3e   : > { %v733_v48 = vor.u32 %v732_v18, %v731_v33  ;;  %v727_v30 = vrot.slane %v725_v45, 5  ;;  %v737_v55 = vrot.slane %v735_v36, 5  ;;  %v4684_v21 = vshll.u32 %v3463_v51, 16 }
  0x3f   : > { %3076 = vmatmul.msk.bf16.gmra.mxu1 %vm449_vm3, %v3642_v54  ;;  %v738_v9 = vrot.slane %v4681_v61, 6  ;;  %v728_v1 = vrot.slane %v4682_v31, 6  ;;  %v741_v53 = vrot.slane %v4683_v16, 5  ;;  %v745_v50 = vshrl.u32 %v3466_v52, 16 }
  0x40   : > { %v742_v25 = vrot.slane %v4684_v21, 6  ;;  %v3710_v39 = vpack.c.b16 %v507_v28, %v506_v58  ;;  %v508_v26 = vunpack.c.l.b16 %v3420_v24  ;;  %v734_v60 = vrot.slane %v733_v48, 4 }
  0x41   : > { %v4685_v0 = vshll.u32 %v3466_v52, 16  ;;  %v608_v12 = vunpack.c.l.b16 %v3681_v29  ;;  %v739_v13 = vor.u32 %v738_v9, %v737_v55  ;;  %v747_v18 = vrot.slane %v745_v50, 5 }
  0x42   : > { %3089 = vmatmul.msk.bf16.gmra.mxu2 %vm449_vm3, %v3649_v10  ;;  %v743_v33 = vor.u32 %v742_v25, %v741_v53  ;;  %v609_v45 = vunpack.c.l.b16 %v3685_v8  ;;  %v714_v36 = vrot.slane %v713_v42, 4  ;;  %v719_v61 = vor.u32 %v718_v32, %v717_v46 }
  0x43   : > { %v748_v27 = vrot.slane %v4685_v0, 6  ;;  %v724_v58 = vrot.slane %v723_v19, 4  ;;  %v729_v31 = vor.u32 %v728_v1, %v727_v30  ;;  %v740_v24 = vsel %vm3588_vm10, %v734_v60, %v739_v13 }
  0x44   : > { %v744_v48 = vrot.slane %v743_v33, 4  ;;  %v3721_v21 = vpack.c.b16 %v508_v26, %v507_v28  ;;  %v759_v0 = vunpack.c.l.b16 %v740_v24  ;;  %v3734_v32 = vpack.c.b16 %v609_v45, %v608_v12  ;;  %v3123_v24 = vld [vmem:[%s4663_s1 + $0x12] sm:$0x3] }
  0x45   : > { %v749_v16 = vor.u32 %v748_v27, %v747_v18  ;;  %v720_v28 = vsel %vm3588_vm10, %v714_v36, %v719_v61  ;;  %v730_v46 = vsel %vm3588_vm10, %v724_v58, %v729_v31  ;;  %v3085_v30 = vrot.slane %v3435_v34, 9 }
  0x46   : > { %v757_v1 = vunpack.c.l.b16 %v720_v28  ;;  %v758_v53 = vunpack.c.l.b16 %v730_v46  ;;  %v596_v55 = vrot.slane %v3449_v40, 5  ;;  %v3086_v25 = vrot.slane %v3463_v51, 9 }
  0x47   : > { %v3725_v9 = vsel %vm3588_vm10, %v744_v48, %v749_v16  ;;  %v600_v50 = vrot.slane %v3466_v52, 5  ;;  %v509_v27 = vunpack.c.l.b16 %v3435_v34  ;;  %v510_v33 = vunpack.c.l.b16 %v3463_v51  ;;  %v3129_v52 = vld [vmem:[%s4663_s1 + $0x14] sm:$0x3]  ;;  %v3118_v34 = vld [vmem:[%s4663_s1 + $0x10] sm:$0x3] }
  0x48   : > { %v760_v42 = vunpack.c.l.b16 %v3725_v9  ;;  %v3752_v60 = vpack.c.b16 %v758_v53, %v757_v1  ;;  %v597_v13 = vsel %vm3541_vm7, %v3085_v30, %v596_v55  ;;  %v3134_v51 = vld [vmem:[%s4663_s1 + $0x16] sm:$0x3]  ;;  %v1205_v58 = vsel %vm462_vm0, %v3129_v52, 0  ;;  %v3800_v30 = vld [vmem:[%s3385_s14 + $0x40] sm:$0xf] }
  0x49   : > { %3094 = vmatmul.msk.bf16.gmra.mxu3 %vm449_vm3, %v3698_v49  ;;  %v3760_v18 = vsel %vm3541_vm7, %v3086_v25, %v600_v50  ;;  %v3764_v40 = vpack.c.b16 %v509_v27, %v508_v26  ;;  %v610_v36 = vunpack.c.l.b16 %v597_v13  ;;  %v1092_v26 = vsel %vm462_vm0, %v3118_v34, 0  ;;  %1214 = vmatpush.bf16.msrb.mxu2 %v1205_v58  ;;  %v3155_v52 = vld [vmem:[%s4663_s1 + $0x1e] sm:$0x3] }
  0x4a   : > { %v3744_v19 = vpack.c.b16 %v760_v42, %v759_v0  ;;  %v611_v61 = vunpack.c.l.b16 %v3760_v18  ;;  %v1262_v31 = vsel %vm462_vm0, %v3134_v51, 0  ;;  %v3782_v48 = vpack.c.b16 %v510_v33, %v509_v27  ;;  %1101 = vmatpush.bf16.msra.mxu0 %v1092_v26  ;;  %v3912_v18 = vld [vmem:[%s3385_s14 + $0x48] sm:$0xf] }
  0x4b   : > { %v1153_v16 = vsel %vm462_vm0, %v3123_v24, 0  ;;  %1271 = vmatpush.bf16.msrb.mxu3 %v1262_v31  ;;  %v3789_v28 = vpack.c.b16 %v3499_v7, %v3476_v59  ;;  %v820_v55 = vunpack.c.l.b16 %v3800_v30  ;;  %v958_v7 = vpack.c.b16 %v606_v14, %v605_v47 }
  0x4c   : > { %1162 = vmatpush.bf16.msrb.mxu1 %v1153_v16  ;;  %v3793_v46 = vpack.c.b16 %v611_v61, %v610_v36  ;;  %v4686_v25 = vpack.c.b16 %v3472_v56, %v3561_v62  ;;  %v3820_v50 = vpack.c.b16 %v759_v0, %v758_v53  ;;  %v1027_v27 = vpack.c.b16 %v755_v20, %v754_v2  ;;  %v3144_v16 = vld [vmem:[%s4663_s1 + $0x1a] sm:$0x3] }
  0x4d   : > { %3099 = vmatmul.msk.bf16.gmra.mxu0 %vm449_vm3, %v3710_v39  ;;  %v3807_v59 = vpack.c.b16 %v820_v55, %v510_v33  ;;  %v3833_v56 = vpack.c.b16 %v608_v12, %v607_v15  ;;  %v878_v62 = vshrl.u32 %v3800_v30, 16  ;;  %v881_v23 = vshll.u32 %v3800_v30, 16  ;;  %v3150_v33 = vld [vmem:[%s4663_s1 + $0x1c] sm:$0x3] }
  0x4e   : > { %v3843_v47 = vpack.c.b16 %v757_v1, %v756_v4  ;;  %v3849_v37 = vpack.c.b16 %v3528_v57, %v3504_v22  ;;  %v3856_v15 = vpack.c.b16 %v610_v36, %v609_v45  ;;  %v3107_v22 = vrot.slane %v3800_v30, 9  ;;  %v3139_v36 = vld [vmem:[%s4663_s1 + $0x18] sm:$0x3] }
  0x4f   : > { %3077 = vmatmul.msk.bf16.gmra.mxu1 %vm449_vm3, %v3721_v21  ;;  %v880_v6 = vrot.slane %v878_v62, 4  ;;  %v883_v2 = vrot.slane %v881_v23, 5  ;;  %v1014_v20 = vrot.slane %v878_v62, 5  ;;  %v1015_v4 = vrot.slane %v881_v23, 6 }
  0x50   : > { %v953_v57 = vrot.slane %v314_v43, 5  ;;  %v1018_v29 = vshrl.u32 %v314_v43, 16  ;;  %v1423_v51 = vsel %vm462_vm0, %v3150_v33, 0  ;;  %v1310_v58 = vsel %vm462_vm0, %v3139_v36, 0 }
  0x51   : > { %v884_v14 = vor.u32 %v883_v2, %v880_v6  ;;  %v1016_v12 = vor.u32 %v1015_v4, %v1014_v20  ;;  %v1480_v26 = vsel %vm462_vm0, %v3155_v52, 0  ;;  %1319 = vmatpush.bf16.msrb.mxu0 %v1310_v58  ;;  %v1086_v23 = vunpack.c.l.b16 %v3912_v18 }
  0x52   : > { %3090 = vmatmul.msk.bf16.gmra.mxu2 %vm449_vm3, %v3734_v32  ;;  %v3867_v45 = vsel %vm3541_vm7, %v3107_v22, %v953_v57  ;;  %vm1657_vm14 = vsmask.f32 256  ;;  %vm2903_vm2 = vcmask 130048  }
  0x53   : > { %v885_v11 = vrot.slane %v884_v14, 4  ;;  %v1017_v53 = vrot.slane %v1016_v12, 4  ;;  %v957_v13 = vunpack.c.l.b16 %v3867_v45  ;;  %v1087_v6 = vpack.c.b16 %v1086_v23, %v820_v55  ;;  %vm4229_vm1 = vmand %vm1549_vm12, %vm1657_vm14 }
  0x59   : > { %3095 = vmatmul.msk.bf16.gmra.mxu3 %vm449_vm3, %v3752_v60 }
  0x5d   : > { %3100 = vmatmul.msk.bf16.gmra.mxu0 %vm449_vm3, %v3764_v40 }
  0x5f   : > { %3078 = vmatmul.msk.bf16.gmra.mxu1 %vm449_vm3, %v3782_v48 }
  0x62   : > { %3091 = vmatmul.msk.bf16.gmra.mxu2 %vm449_vm3, %v3793_v46 }
  0x69   : > { %3096 = vmatmul.msk.bf16.gmra.mxu3 %vm449_vm3, %v3744_v19 }
  0x6d   : > { %3101 = vmatmul.msk.bf16.gmra.mxu0 %vm449_vm3, %v3807_v59 }
  0x6f   : > { %3103 = vmatmul.msk.bf16.vlgmr.msra.gmra.mxu1 %vm449_vm3, %v4686_v25  ;;  %v1371_v25 = vsel %vm462_vm0, %v3144_v16, 0 }
  0x70   : > { %1380 = vmatpush.bf16.msra.mxu1 %v1371_v25 }
  0x72   : > { %3109 = vmatmul.msk.bf16.vlgmr.msra.gmra.mxu2 %vm449_vm3, %v958_v7  ;;  %v3899_v7 = vpack.c.b16 %v957_v13, %v611_v61 }
  0x73   : > { %1432 = vmatpush.bf16.msra.mxu2 %v1423_v51 }
  0x79   : > { %3114 = vmatmul.msk.bf16.vlgmr.msra.gmra.mxu3 %vm449_vm3, %v1027_v27 }
  0x7a   : > { %1489 = vmatpush.bf16.msra.mxu3 %v1480_v26  ;;  %v316_v26 = vld [vmem:[%s3385_s14 + $0x4c] sm:$0x3] }
  0x7d   : > { %3119 = vmatmul.msk.bf16.vlgmr.msra.gmra.mxu0 %vm449_vm3, %v3642_v54  ;;  %v887_v54 = vshll.u32 %v314_v43, 16 }
  0x7f   : > { %3104 = vmatmul.msk.bf16.gmra.mxu1 %vm449_vm3, %v3789_v28  ;;  %v889_v17 = vrot.slane %v887_v54, 5  ;;  %v1021_v0 = vrot.slane %v887_v54, 6 }
  0x81   : > { %v890_v8 = vsel %vm3439_vm4, %v885_v11, %v889_v17 }
  0x82   : > { %3110 = vmatmul.msk.bf16.gmra.mxu2 %vm449_vm3, %v3833_v56  ;;  %v3869_v1 = vunpack.c.l.b16 %v890_v8 }
  0x84   : > { %v3888_v31 = vpack.c.b16 %v3869_v1, %v3537_v3 }
  0x89   : > { %3115 = vmatmul.msk.bf16.gmra.mxu3 %vm449_vm3, %v3843_v47 }
  0x8d   : > { %3120 = vmatmul.msk.bf16.gmra.mxu0 %vm449_vm3, %v3721_v21  ;;  %v1020_v21 = vrot.slane %v1018_v29, 5 }
  0x8f   : > { %3105 = vmatmul.msk.bf16.gmra.mxu1 %vm449_vm3, %v3849_v37  ;;  %v1022_v34 = vor.u32 %v1021_v0, %v1020_v21  ;;  %v1135_v0 = vshll.u32 %v3912_v18, 16 }
  0x91   : > { %v3903_v3 = vsel %vm3588_vm10, %v1017_v53, %v1022_v34  ;;  %v1137_v58 = vrot.slane %v1135_v0, 5 }
  0x92   : > { %3111 = vmatmul.msk.bf16.gmra.mxu2 %vm449_vm3, %v3856_v15 }
  0x99   : > { %3116 = vmatmul.msk.bf16.gmra.mxu3 %vm449_vm3, %v3820_v50 }
  0x9c   : > { %v480_v24 = vpop.f32.mrf.mxu1 }
  0x9d   : > { %3121 = vmatmul.msk.bf16.gmra.mxu0 %vm449_vm3, %v3782_v48  ;;  %v1026_v48 = vunpack.c.l.b16 %v3903_v3 }
  0x9f   : > { %3106 = vmatmul.msk.bf16.gmra.mxu1 %vm449_vm3, %v3888_v31  ;;  %v3918_v61 = vpack.c.b16 %v1026_v48, %v760_v42 }
  0xa2   : > { %3112 = vmatmul.msk.bf16.gmra.mxu2 %vm449_vm3, %v3899_v7 }
  0xa4   : > { %v482_v27 = vpop.f32.mrf.mxu1 }
  0xa5   : > { %v485_v62 = vpop.f32.mrf.mxu2 }
  0xa9   : > { %3117 = vmatmul.msk.bf16.gmra.mxu3 %vm449_vm3, %v3918_v61 }
  0xaa   : > { %v475_v2 = vpop.f32.mrf.mxu0 }
  0xac   : > { %v3927_v43 = vpop.f32.mrf.mxu3  ;;  %v539_v14 = vpop.f32.mrf.mxu1 }
  0xad   : > { %3122 = vmatmul.msk.bf16.gmra.mxu0 %vm449_vm3, %v1087_v6  ;;  %v487_v9 = vpop.f32.mrf.mxu2  ;;  %v540_v42 = vadd.f32 %v539_v14, %v475_v2 }
  0xaf   : > { %3124 = vmatmul.msk.bf16.vlgmr.msrb.gmra.mxu1 %vm449_vm3, %v3495_v5 }
  0xb2   : > { %v477_v54 = vpop.f32.mrf.mxu0  ;;  %3130 = vmatmul.msk.bf16.vlgmr.msrb.gmra.mxu2 %vm449_vm3, %v3649_v10 }
  0xb4   : > { %v3934_v11 = vpop.f32.mrf.mxu3  ;;  %v541_v30 = vpop.f32.mrf.mxu1 }
  0xb5   : > { %v640_v17 = vpop.f32.mrf.mxu2  ;;  %v542_v55 = vadd.f32 %v541_v30, %v477_v54 }
  0xb6   : > { %v660_v20 = vadd.f32 %v640_v17, %v540_v42  ;;  %v1141_v42 = vshll.u32 %v316_v26, 16  ;;  %v1245_v17 = vrot.slane %v1135_v0, 6 }
  0xb8   : > { %v1251_v0 = vrot.slane %v1141_v42, 6 }
  0xb9   : > { %3135 = vmatmul.msk.bf16.vlgmr.msrb.gmra.mxu3 %vm449_vm3, %v3698_v49  ;;  %v1132_v49 = vshrl.u32 %v3912_v18, 16 }
  0xba   : > { %v849_v4 = vpop.f32.mrf.mxu0 }
  0xbb   : > { %v1134_v51 = vrot.slane %v1132_v49, 4  ;;  %v1244_v30 = vrot.slane %v1132_v49, 5 }
  0xbc   : > { %v789_v22 = vpop.f32.mrf.mxu3  ;;  %v544_v57 = vpop.f32.mrf.mxu1 }
  0xbd   : > { %v809_v29 = vadd.f32 %v789_v22, %v660_v20  ;;  %3140 = vmatmul.msk.bf16.vlgmr.msrb.gmra.mxu0 %vm449_vm3, %v3710_v39  ;;  %v642_v5 = vpop.f32.mrf.mxu2  ;;  %v545_v8 = vadd.f32 %v544_v57, %v480_v24  ;;  %v1138_v16 = vor.u32 %v1137_v58, %v1134_v51  ;;  %v1248_v20 = vshrl.u32 %v316_v26, 16 }
  0xbe   : > { %v661_v12 = vadd.f32 %v642_v5, %v542_v55 }
  0xbf   : > { %v3940_v10 = vadd.f32 %v849_v4, %v809_v29  ;;  %3125 = vmatmul.msk.bf16.gmra.mxu1 %vm449_vm3, %v3519_v41  ;;  %v1139_v54 = vrot.slane %v1138_v16, 4  ;;  %v1250_v49 = vrot.slane %v1248_v20, 5 }
  0xc2   : > { %v3944_v21 = vpop.f32.mrf.mxu0  ;;  %3131 = vmatmul.msk.bf16.gmra.mxu2 %vm449_vm3, %v3734_v32 }
  0xc4   : > { %v791_v53 = vpop.f32.mrf.mxu3  ;;  %v546_v39 = vpop.f32.mrf.mxu1 }
  0xc5   : > { %v3950_v33 = vadd.f32 %v791_v53, %v661_v12  ;;  %v645_v36 = vpop.f32.mrf.mxu2  ;;  %v547_v52 = vadd.f32 %v546_v39, %v482_v27  ;;  %v1246_v12 = vor.u32 %v1245_v17, %v1244_v30 }
  0xc6   : > { %v662_v34 = vadd.f32 %v645_v36, %v545_v8 }
  0xc9   : > { %3136 = vmatmul.msk.bf16.gmra.mxu3 %vm449_vm3, %v3752_v60  ;;  %v1143_v60 = vrot.slane %v1141_v42, 5 }
  0xca   : > { %v854_v41 = vpop.f32.mrf.mxu0 }
  0xcb   : > { %v1144_v57 = vsel %vm3439_vm4, %v1139_v54, %v1143_v60 }
  0xcc   : > { %v794_v24 = vpop.f32.mrf.mxu3  ;;  %v549_v32 = vpop.f32.mrf.mxu1  ;;  %v3970_v53 = vunpack.c.l.b16 %v1144_v57 }
  0xcd   : > { %v811_v25 = vadd.f32 %v794_v24, %v662_v34  ;;  %3141 = vmatmul.msk.bf16.gmra.mxu0 %vm449_vm3, %v3764_v40  ;;  %v647_v6 = vpop.f32.mrf.mxu2  ;;  %v550_v2 = vadd.f32 %v549_v32, %v485_v62  ;;  %v3128_v40 = vrot.slane %v3912_v18, 9  ;;  %v1195_v62 = vrot.slane %v316_v26, 5 }
  0xce   : > { %v663_v14 = vadd.f32 %v647_v6, %v547_v52  ;;  %v1247_v52 = vrot.slane %v1246_v12, 4  ;;  %v1252_v34 = vor.u32 %v1251_v0, %v1250_v49 }
  0xcf   : > { %v3957_v27 = vadd.f32 %v854_v41, %v811_v25  ;;  %3126 = vmatmul.msk.bf16.gmra.mxu1 %vm449_vm3, %v3551_v63 }
  0xd0   : > { %v3990_v16 = vsel %vm3588_vm10, %v1247_v52, %v1252_v34 }
  0xd1   : > { %v1256_v25 = vunpack.c.l.b16 %v3990_v16 }
  0xd2   : > { %v3961_v55 = vpop.f32.mrf.mxu0  ;;  %3132 = vmatmul.msk.bf16.gmra.mxu2 %vm449_vm3, %v3793_v46  ;;  %v3974_v46 = vsel %vm3541_vm7, %v3128_v40, %v1195_v62 }
  0xd3   : > { %v1199_v36 = vunpack.c.l.b16 %v3974_v46 }
  0xd4   : > { %v796_v4 = vpop.f32.mrf.mxu3  ;;  %v551_v22 = vpop.f32.mrf.mxu1 }
  0xd5   : > { %v3968_v29 = vadd.f32 %v796_v4, %v663_v14  ;;  %v650_v63 = vpop.f32.mrf.mxu2  ;;  %v552_v5 = vadd.f32 %v551_v22, %v487_v9  ;;  %v1148_v9 = vpack.c.b16 %v3970_v53, %v3869_v1 }
  0xd6   : > { %v664_v8 = vadd.f32 %v650_v63, %v550_v2 }
  0xd9   : > { %3137 = vmatmul.msk.bf16.gmra.mxu3 %vm449_vm3, %v3744_v19  ;;  %v1200_v19 = vpack.c.b16 %v1199_v36, %v957_v13  ;;  %v1257_v13 = vpack.c.b16 %v1256_v25, %v1026_v48 }
  0xda   : > { %v859_v39 = vpop.f32.mrf.mxu0 }
  0xdc   : > { %v799_v51 = vpop.f32.mrf.mxu3  ;;  %v554_v58 = vpop.f32.mrf.mxu1 }
  0xdd   : > { %v813_v41 = vadd.f32 %v799_v51, %v664_v8  ;;  %3142 = vmatmul.msk.bf16.gmra.mxu0 %vm449_vm3, %v3807_v59  ;;  %v652_v26 = vpop.f32.mrf.mxu2  ;;  %v555_v24 = vadd.f32 %v554_v58, %v3927_v43  ;;  %v3998_v59 = vld [vmem:[%s3385_s14 + $0x50] sm:$0xf] }
  0xde   : > { %v665_v32 = vadd.f32 %v652_v26, %v552_v5  ;;  %v1304_v54 = vunpack.c.l.b16 %v3998_v59  ;;  %v1353_v49 = vshll.u32 %v3998_v59, 16 }
  0xdf   : > { %v873_v1 = vadd.f32 %v859_v39, %v813_v41  ;;  %3127 = vmatmul.msk.bf16.gmra.mxu1 %vm449_vm3, %v1148_v9 }
  0xe0   : > { %v1305_v30 = vpack.c.b16 %v1304_v54, %v1086_v23 }
  0xe2   : > { %v3994_v6 = vpop.f32.mrf.mxu0  ;;  %3133 = vmatmul.msk.bf16.gmra.mxu2 %vm449_vm3, %v1200_v19 }
  0xe4   : > { %v801_v43 = vpop.f32.mrf.mxu3  ;;  %v556_v45 = vpop.f32.mrf.mxu1 }
  0xe5   : > { %v4000_v2 = vadd.f32 %v801_v43, %v665_v32  ;;  %v655_v14 = vpop.f32.mrf.mxu2  ;;  %v557_v42 = vadd.f32 %v556_v45, %v3934_v11 }
  0xe6   : > { %v666_v60 = vadd.f32 %v655_v14, %v555_v24 }
  0xe9   : > { %3138 = vmatmul.msk.bf16.gmra.mxu3 %vm449_vm3, %v1257_v13  ;;  %v1463_v13 = vrot.slane %v1353_v49, 6 }
  0xea   : > { %v864_v17 = vpop.f32.mrf.mxu0 }
  0xec   : > { %v804_v20 = vpop.f32.mrf.mxu3  ;;  %v922_v40 = vpop.f32.mrf.mxu1 }
  0xed   : > { %v815_v62 = vadd.f32 %v804_v20, %v666_v60  ;;  %3143 = vmatmul.msk.bf16.gmra.mxu0 %vm449_vm3, %v1305_v30  ;;  %v657_v3 = vpop.f32.mrf.mxu2  ;;  %v942_v48 = vadd.f32 %v922_v40, %v3940_v10 }
  0xee   : > { %v667_v4 = vadd.f32 %v657_v3, %v557_v42  ;;  %v3149_v42 = vrot.slane %v3998_v59, 9 }
  0xef   : > { %v4013_v22 = vadd.f32 %v864_v17, %v815_v62  ;;  %3145 = vmatmul.msk.bf16.vlgmr.msra.gmra.mxu1 %vm449_vm3, %v3789_v28 }
  0xf2   : > { %3151 = vmatmul.msk.bf16.vlgmr.msra.gmra.mxu2 %vm449_vm3, %v3833_v56  ;;  %v1350_v56 = vshrl.u32 %v3998_v59, 16  ;;  %v4040_v34 = vpop.f32.mrf.mxu0 }
  0xf4   : > { %v806_v18 = vpop.f32.mrf.mxu3  ;;  %v4019_v23 = vpop.f32.mrf.mxu1  ;;  %v1352_v9 = vrot.slane %v1350_v56, 4 }
  0xf5   : > { %v4021_v11 = vadd.f32 %v806_v18, %v667_v4  ;;  %v986_v57 = vpop.f32.mrf.mxu2 }
  0xf6   : > { %v1006_v63 = vadd.f32 %v986_v57, %v942_v48 }
  0xf9   : > { %3156 = vmatmul.msk.bf16.vlgmr.msra.gmra.mxu3 %vm449_vm3, %v3843_v47 }
  0xfa   : > { %v4051_v45 = vpop.f32.mrf.mxu0 }
  0xfc   : > { %v1055_v10 = vpop.f32.mrf.mxu3  ;;  %v927_v5 = vpop.f32.mrf.mxu1 }
  0xfd   : > { %v4025_v8 = vadd.f32 %v1055_v10, %v1006_v63  ;;  %v4027_v12 = vpop.f32.mrf.mxu2  ;;  %v944_v28 = vadd.f32 %v927_v5, %v3957_v27  ;;  %v1355_v27 = vrot.slane %v1353_v49, 5 }
  0xff   : > { %3146 = vmatmul.msk.bf16.gmra.mxu1 %vm449_vm3, %v3849_v37  ;;  %v318_v37 = vld [vmem:[%s3385_s14 + $0x54] sm:$0x3]  ;;  %v1356_v58 = vor.u32 %v1355_v27, %v1352_v9 }
 0x100   : > { %v1359_v32 = vshll.u32 %v318_v37, 16  ;;  %v1466_v14 = vshrl.u32 %v318_v37, 16  ;;  %v1413_v54 = vrot.slane %v318_v37, 5 }
 0x101   : > { %v1357_v19 = vrot.slane %v1356_v58, 4 }
 0x102   : > { %3152 = vmatmul.msk.bf16.gmra.mxu2 %vm449_vm3, %v3856_v15  ;;  %v1361_v43 = vrot.slane %v1359_v32, 5  ;;  %v1468_v40 = vrot.slane %v1466_v14, 5  ;;  %v1469_v62 = vrot.slane %v1359_v32, 6  ;;  %v4066_v18 = vpop.f32.mrf.mxu0 }
 0x104   : > { %v4036_v47 = vpop.f32.mrf.mxu3  ;;  %v4038_v0 = vpop.f32.mrf.mxu1  ;;  %v1470_v4 = vor.u32 %v1469_v62, %v1468_v40 }
 0x105   : > { %v991_v39 = vpop.f32.mrf.mxu2 }
 0x106   : > { %v1008_v52 = vadd.f32 %v991_v39, %v944_v28 }
 0x109   : > { %3157 = vmatmul.msk.bf16.gmra.mxu3 %vm449_vm3, %v3820_v50  ;;  %v1462_v50 = vrot.slane %v1350_v56, 5 }
 0x10a   : > { %v4084_v9 = vpop.f32.mrf.mxu0 }
 0x10b   : > { %v1464_v20 = vor.u32 %v1463_v13, %v1462_v50  ;;  %v3160_v50 = vld [vmem:[%s4665_s3 + $0x2] sm:$0x3] }
 0x10c   : > { %v1060_v51 = vpop.f32.mrf.mxu3  ;;  %v932_v15 = vpop.f32.mrf.mxu1  ;;  %v1860_v13 = vsel %vm462_vm0, %v3160_v50, 0 }
 0x10d   : > { %v4045_v41 = vadd.f32 %v1060_v51, %v1008_v52  ;;  %v4047_v26 = vpop.f32.mrf.mxu2  ;;  %v946_v24 = vadd.f32 %v932_v15, %v873_v1  ;;  %v1465_v48 = vrot.slane %v1464_v20, 4  ;;  %1869 = vmatpush.bf16.msra.mxu0 %v1860_v13 }
 0x10f   : > { %3147 = vmatmul.msk.bf16.gmra.mxu1 %vm449_vm3, %v3888_v31  ;;  %v1362_v31 = vsel %vm3439_vm4, %v1357_v19, %v1361_v43 }
 0x110   : > { %v1365_v3 = vunpack.c.l.b16 %v1362_v31 }
 0x112   : > { %3153 = vmatmul.msk.bf16.gmra.mxu2 %vm449_vm3, %v3899_v7  ;;  %v1414_v7 = vsel %vm3541_vm7, %v3149_v42, %v1413_v54  ;;  %v1366_v57 = vpack.c.b16 %v1365_v3, %v3970_v53  ;;  %v4093_v15 = vpop.f32.mrf.mxu0 }
 0x113   : > { %v1417_v59 = vunpack.c.l.b16 %v1414_v7 }
 0x114   : > { %v4056_v60 = vpop.f32.mrf.mxu3  ;;  %v4058_v1 = vpop.f32.mrf.mxu1 }
 0x115   : > { %v996_v30 = vpop.f32.mrf.mxu2  ;;  %v1418_v49 = vpack.c.b16 %v1417_v59, %v1199_v36 }
 0x116   : > { %v1010_v17 = vadd.f32 %v996_v30, %v946_v24 }
 0x119   : > { %3158 = vmatmul.msk.bf16.gmra.mxu3 %vm449_vm3, %v3918_v61  ;;  %v1471_v61 = vsel %vm3588_vm10, %v1465_v48, %v1470_v4 }
 0x11a   : > { %v1474_v39 = vunpack.c.l.b16 %v1471_v61  ;;  %v4097_v19 = vpop.f32.mrf.mxu0  ;;  %v870_v61 = vadd.f32 %v3944_v21, %v3950_v33 }
 0x11c   : > { %v1065_v63 = vpop.f32.mrf.mxu3  ;;  %v937_v10 = vpop.f32.mrf.mxu1 }
 0x11d   : > { %v4069_v5 = vadd.f32 %v1065_v63, %v1010_v17  ;;  %v4071_v28 = vpop.f32.mrf.mxu2  ;;  %v948_v56 = vadd.f32 %v937_v10, %v4013_v22  ;;  %v1475_v22 = vpack.c.b16 %v1474_v39, %v1256_v25 }
 0x11f   : > { %3148 = vmatmul.msk.bf16.gmra.mxu1 %vm449_vm3, %v1366_v57 }
 0x122   : > { %3154 = vmatmul.msk.bf16.gmra.mxu2 %vm449_vm3, %v1418_v49  ;;  %v4107_v14 = vpop.f32.mrf.mxu0  ;;  %v3314_v49 = vmov 0  }
 0x123   : > { %1551 = vst.msk [vmem:[#allocation2 + $0x8] sm:$0xf] %vm1547_vm11, %v3314_v49 }
 0x124   : > { %v4080_v53 = vpop.f32.mrf.mxu3  ;;  %v4082_v52 = vpop.f32.mrf.mxu1  ;;  %1552 = vst.msk [vmem:[#allocation2 + $0xc] sm:$0x1] %vm1549_vm12, %v3314_v49 }
 0x125   : > { %v1001_v27 = vpop.f32.mrf.mxu2  ;;  %1548 = vst.msk [vmem:[#allocation2] sm:$0xf] %vm1547_vm11, %v3314_v49 }
 0x126   : > { %v1012_v46 = vadd.f32 %v1001_v27, %v948_v56  ;;  %1550 = vst.msk [vmem:[#allocation2 + $0x4] sm:$0x1] %vm1549_vm12, %v3314_v49  ;;  %v1123_v27 = vadd.f32 %v4051_v45, %v4025_v8 }
 0x127   : > { %1553 = vst.msk [vmem:[#allocation2 + $0x10] sm:$0xf] %vm1547_vm11, %v3314_v49 }
 0x128   : > { %1554 = vst.msk [vmem:[#allocation2 + $0x14] sm:$0x1] %vm1549_vm12, %v3314_v49 }
 0x129   : > { %3159 = vmatmul.msk.bf16.gmra.mxu3 %vm449_vm3, %v1475_v22  ;;  %v943_v22 = vadd.f32 %v4019_v23, %v870_v61  ;;  %1555 = vst.msk [vmem:[#allocation2 + $0x18] sm:$0xf] %vm1547_vm11, %v3314_v49 }
 0x12a   : > { %v4119_v20 = vpop.f32.mrf.mxu0  ;;  %1556 = vst.msk [vmem:[#allocation2 + $0x1c] sm:$0x1] %vm1549_vm12, %v3314_v49 }
 0x12b   : > { %1557 = vst.msk [vmem:[#allocation2 + $0x20] sm:$0xf] %vm1547_vm11, %v3314_v49 }
 0x12c   : > { %v1070_v44 = vpop.f32.mrf.mxu3  ;;  %v1164_v36 = vpop.f32.mrf.mxu1  ;;  %1558 = vst.msk [vmem:[#allocation2 + $0x24] sm:$0x1] %vm1549_vm12, %v3314_v49 }
 0x12d   : > { %v4089_v37 = vadd.f32 %v1070_v44, %v1012_v46  ;;  %v4091_v51 = vpop.f32.mrf.mxu2  ;;  %v1007_v46 = vadd.f32 %v4027_v12, %v943_v22  ;;  %v1184_v21 = vadd.f32 %v1164_v36, %v1123_v27  ;;  %1559 = vst.msk [vmem:[#allocation2 + $0x28] sm:$0xf] %vm1547_vm11, %v3314_v49  ;;  %v872_v36 = vadd.f32 %v3961_v55, %v3968_v29 }
 0x12e   : > { %1560 = vst.msk [vmem:[#allocation2 + $0x2c] sm:$0x1] %vm1549_vm12, %v3314_v49 }
 0x12f   : > { %v1076_v50 = vadd.f32 %v4036_v47, %v1007_v46  ;;  %1561 = vst.msk [vmem:[#allocation2 + $0x30] sm:$0xf] %vm1547_vm11, %v3314_v49  ;;  %v1712_v47 = vld [vmem:[%s4665_s3] sm:$0x3]  ;;  %v945_v46 = vadd.f32 %v4038_v0, %v872_v36  ;;  %v874_v36 = vadd.f32 %v3994_v6, %v4000_v2 }
 0x130   : > { %1562 = vst.msk [vmem:[#allocation2 + $0x34] sm:$0x1] %vm1549_vm12, %v3314_v49 }
 0x131   : > { %v1124_v8 = vadd.f32 %v4066_v18, %v1076_v50  ;;  %1563 = vst.msk [vmem:[#allocation2 + $0x38] sm:$0xf] %vm1547_vm11, %v3314_v49  ;;  %v1009_v29 = vadd.f32 %v4047_v26, %v945_v46  ;;  %v3198_v26 = vld [vmem:[%s4665_s3 + $0x6] sm:$0x3] }
 0x132   : > { %v4129_v59 = vpop.f32.mrf.mxu0  ;;  %1564 = vst.msk [vmem:[#allocation2 + $0x3c] sm:$0x1] %vm1549_vm12, %v3314_v49 }
 0x133   : > { %1565 = vst.msk [vmem:[#allocation2 + $0x40] sm:$0xf] %vm1547_vm11, %v3314_v49 }
 0x134   : > { %v4095_v58 = vpop.f32.mrf.mxu3  ;;  %v1166_v24 = vpop.f32.mrf.mxu1  ;;  %1566 = vst.msk [vmem:[#allocation2 + $0x44] sm:$0x1] %vm1549_vm12, %v3314_v49 }
 0x135   : > { %v1216_v32 = vpop.f32.mrf.mxu2  ;;  %v1185_v45 = vadd.f32 %v1166_v24, %v1124_v8  ;;  %1567 = vst.msk [vmem:[#allocation2 + $0x48] sm:$0xf] %vm1547_vm11, %v3314_v49 }
 0x136   : > { %v1236_v13 = vadd.f32 %v1216_v32, %v1184_v21  ;;  %1568 = vst.msk [vmem:[#allocation2 + $0x4c] sm:$0x1] %vm1549_vm12, %v3314_v49  ;;  %v4197_v49 = vld [vmem:[%s4664_s2] ss:$0 sm:$0xff] }
 0x13a   : > { %v1321_v63 = vpop.f32.mrf.mxu0 }
 0x13c   : > { %v1273_v16 = vpop.f32.mrf.mxu3  ;;  %v4099_v25 = vpop.f32.mrf.mxu1 }
 0x13d   : > { %v4101_v43 = vpop.f32.mrf.mxu2  ;;  %v1293_v12 = vadd.f32 %v1273_v16, %v1236_v13  ;;  %v1924_v16 = vsel %vm462_vm0, %v1712_v47, 0 }
 0x13e   : > { %v1237_v27 = vadd.f32 %v4101_v43, %v1185_v45  ;;  %1933 = vmatpush.bf16.msrb.mxu1 %v1924_v16  ;;  %v1125_v43 = vadd.f32 %v4084_v9, %v4045_v41 }
 0x13f   : > { %v1341_v22 = vadd.f32 %v1321_v63, %v1293_v12  ;;  %v3193_v63 = vld [vmem:[%s4665_s3 + $0x4] sm:$0x3] }
 0x140   : > { %v2038_v0 = vsel %vm462_vm0, %v3193_v63, 0  ;;  %v1186_v8 = vadd.f32 %v4099_v25, %v1125_v43  ;;  %v1704_v43 = vld [vmem:[#allocation2] sm:$0xf] }
 0x141   : > { %2047 = vmatpush.bf16.msrb.mxu2 %v2038_v0 }
 0x142   : > { %v1323_v33 = vpop.f32.mrf.mxu0 }
 0x144   : > { %v4109_v42 = vpop.f32.mrf.mxu3  ;;  %v4111_v54 = vpop.f32.mrf.mxu1 }
 0x145   : > { %v4113_v31 = vpop.f32.mrf.mxu2  ;;  %v1294_v50 = vadd.f32 %v4109_v42, %v1237_v27  ;;  %v2120_v42 = vsel %vm462_vm0, %v3198_v26, 0 }
 0x146   : > { %v1238_v45 = vadd.f32 %v4113_v31, %v1186_v8  ;;  %2129 = vmatpush.bf16.msrb.mxu3 %v2120_v42  ;;  %v1725_v8 = vshll.u32 %v1704_v43, 16 }
 0x147   : > { %v1342_v12 = vadd.f32 %v1323_v33, %v1294_v50 }
 0x14a   : > { %v1326_v21 = vpop.f32.mrf.mxu0 }
 0x14c   : > { %v4115_v30 = vpop.f32.mrf.mxu3  ;;  %v4117_v17 = vpop.f32.mrf.mxu1 }
 0x14d   : > { %v4121_v40 = vpop.f32.mrf.mxu2  ;;  %v1295_v46 = vadd.f32 %v4115_v30, %v1238_v45  ;;  %v876_v30 = vadd.f32 %v4040_v34, %v4021_v11  ;;  %v1653_v34 = vld [vmem:[#allocation2 + $0x8] sm:$0xf] }
 0x14f   : > { %v1343_v50 = vadd.f32 %v1326_v21, %v1295_v46  ;;  %v949_v42 = vadd.f32 %v4082_v52, %v876_v30  ;;  %v1713_v52 = vld [vmem:[#allocation2 + $0x4] sm:$0x1]  ;;  %v1955_v46 = vld [vmem:[#allocation2] sm:$0xe] }
 0x154   : > { %v4123_v62 = vpop.f32.mrf.mxu3  ;;  %v4125_v3 = vpop.f32.mrf.mxu1 }
 0x155   : > { %v4127_v7 = vpop.f32.mrf.mxu2 }
 0x15c   : > { %v4131_v48 = vpop.f32.mrf.mxu3  ;;  %v4133_v4 = vpop.f32.mrf.mxu1 }
 0x15d   : > { %v4135_v57 = vpop.f32.mrf.mxu2 }
 0x164   : > { %v4137_v10 = vpop.f32.mrf.mxu3  ;;  %v4139_v56 = vpop.f32.mrf.mxu1 }
 0x165   : > { %v4144_v39 = vpop.f32.mrf.mxu2 }
 0x16c   : > { %v4157_v44 = vpop.f32.mrf.mxu3  ;;  %v1382_v23 = vpop.f32.mrf.mxu1 }
 0x16d   : > { %v4161_v61 = vpop.f32.mrf.mxu2  ;;  %v1402_v55 = vadd.f32 %v1382_v23, %v1341_v22  ;;  %v1078_v23 = vadd.f32 %v4056_v60, %v1009_v29  ;;  %v947_v60 = vadd.f32 %v4058_v1, %v874_v36 }
 0x16f   : > { %v1126_v27 = vadd.f32 %v4093_v15, %v1078_v23  ;;  %v1011_v31 = vadd.f32 %v4071_v28, %v947_v60  ;;  %v1722_v28 = vshrl.u32 %v1704_v43, 16 }
 0x171   : > { %v1187_v29 = vadd.f32 %v4111_v54, %v1126_v27  ;;  %v1080_v0 = vadd.f32 %v4080_v53, %v1011_v31 }
 0x173   : > { %v1239_v6 = vadd.f32 %v4121_v40, %v1187_v29 }
 0x174   : > { %v4176_v32 = vpop.f32.mrf.mxu3  ;;  %v1384_v18 = vpop.f32.mrf.mxu1 }
 0x175   : > { %v1434_v24 = vpop.f32.mrf.mxu2  ;;  %v1403_v22 = vadd.f32 %v1384_v18, %v1342_v12  ;;  %v1296_v11 = vadd.f32 %v4123_v62, %v1239_v6  ;;  %v1659_v12 = vld [vmem:[#allocation2 + $0xc] sm:$0x1]  ;;  %v1727_v62 = vrot.slane %v1725_v8, 5 }
 0x176   : > { %v1454_v13 = vadd.f32 %v1434_v24, %v1402_v55  ;;  %v1328_v24 = vpop.f32.mrf.mxu0 }
 0x177   : > { %v1344_v29 = vadd.f32 %v1328_v24, %v1296_v11  ;;  %v3167_v11 = vld [vmem:[#allocation2] sm:$0xf] }
 0x17c   : > { %v1491_v41 = vpop.f32.mrf.mxu3  ;;  %v1387_v9 = vpop.f32.mrf.mxu1 }
 0x17d   : > { %v1511_v47 = vadd.f32 %v1491_v41, %v1454_v13  ;;  %v1436_v25 = vpop.f32.mrf.mxu2  ;;  %v1404_v23 = vadd.f32 %v1387_v9, %v1343_v50  ;;  %v1127_v41 = vadd.f32 %v4097_v19, %v4069_v5  ;;  %v1128_v9 = vadd.f32 %v4107_v14, %v1080_v0  ;;  %v3219_v50 = vld [vmem:[%s4665_s3 + $0x8] sm:$0x3] }
 0x17e   : > { %v1455_v33 = vadd.f32 %v1436_v25, %v1403_v22  ;;  %v1331_v19 = vpop.f32.mrf.mxu0 }
 0x17f   : > { %v1523_v16 = vadd.f32 %v4197_v49, %v1511_v47  ;;  %v1188_v5 = vadd.f32 %v4117_v17, %v1127_v41  ;;  %v1189_v14 = vadd.f32 %v4125_v3, %v1128_v9 }
 0x181   : > { %v1531_v55 = vmax.f32 %v1523_v16, 0.0  ;;  %v1724_v16 = vrot.slane %v1722_v28, 4  ;;  %v1241_v8 = vadd.f32 %v4135_v57, %v1189_v14 }
 0x183   : > { %v1539_v63 = vpack.c.bf16 %v1531_v55, %v1531_v55  ;;  %v1013_v55 = vadd.f32 %v4091_v51, %v949_v42  ;;  %v1731_v51 = vshll.u32 %v1713_v52, 16 }
 0x184   : > { %v1493_v2 = vpop.f32.mrf.mxu3  ;;  %v1389_v18 = vpop.f32.mrf.mxu1 }
 0x185   : > { %v1570_v15 = vshrl.u32 %v1539_v63, 16  ;;  %v1512_v1 = vadd.f32 %v1493_v2, %v1455_v33  ;;  %v1439_v13 = vpop.f32.mrf.mxu2  ;;  %v1573_v26 = vshll.u32 %v1539_v63, 16  ;;  %v1240_v33 = vadd.f32 %v4127_v7, %v1188_v5 }
 0x186   : > { %v1456_v36 = vadd.f32 %v1439_v13, %v1404_v23  ;;  %v1981_v2 = vrot.slane %v1713_v52, 5  ;;  %v2314_v7 = vsel %vm462_vm0, %v3219_v50, 0  ;;  %v1405_v0 = vadd.f32 %v1389_v18, %v1344_v29  ;;  %v1333_v5 = vpop.f32.mrf.mxu0 }
 0x187   : > { %v1572_v54 = vrot.slane %v1570_v15, 7  ;;  %v1524_v21 = vadd.f32 %v4197_v49, %v1512_v1  ;;  %v3185_v15 = vrot.slane %v1955_v46, 9  ;;  %v1728_v1 = vor.u32 %v1727_v62, %v1724_v16  ;;  %2323 = vmatpush.bf16.msrb.mxu0 %v2314_v7 }
 0x188   : > { %v1082_v24 = vadd.f32 %v4095_v58, %v1013_v55  ;;  %v1297_v28 = vadd.f32 %v4131_v48, %v1240_v33  ;;  %v1298_v62 = vadd.f32 %v4137_v10, %v1241_v8 }
 0x189   : > { %v1575_v45 = vor.u32 %v1573_v26, %v1572_v54  ;;  %v1576_v47 = vrot.slane %v1572_v54, 4  ;;  %v1532_v25 = vmax.f32 %v1524_v21, 0.0  ;;  %v1662_v54 = vld [vmem:[#allocation2 + $0x10] sm:$0xf]  ;;  %v1665_v26 = vld [vmem:[#allocation2 + $0x14] sm:$0x1] }
 0x18a   : > { %v1345_v9 = vadd.f32 %v1331_v19, %v1297_v28  ;;  %v1346_v8 = vadd.f32 %v1333_v5, %v1298_v62 }
 0x18b   : > { %v1654_v22 = vsel %vm4218_vm15, %v1575_v45, %v1653_v34  ;;  %v1660_v27 = vsel %vm4229_vm1, %v1576_v47, %v1659_v12  ;;  %v1540_v60 = vpack.c.bf16 %v1532_v25, %v1532_v25  ;;  %v1129_v34 = vadd.f32 %v4119_v20, %v4089_v37 }
 0x18c   : > { %1655 = vst [vmem:[#allocation2 + $0x8] sm:$0xf] %v1654_v22  ;;  %v1496_v17 = vpop.f32.mrf.mxu3  ;;  %v1392_v31 = vpop.f32.mrf.mxu1  ;;  %v1729_v12 = vrot.slane %v1728_v1, 4  ;;  %v1733_v45 = vrot.slane %v1731_v51, 5  ;;  %v1982_v25 = vsel %vm3541_vm7, %v3185_v15, %v1981_v2  ;;  %v1671_v2 = vld [vmem:[#allocation2 + $0x1c] sm:$0x1] }
 0x18d   : > { %1661 = vst [vmem:[#allocation2 + $0xc] sm:$0x1] %v1660_v27  ;;  %v1578_v63 = vshrl.u32 %v1540_v60, 16  ;;  %v1513_v43 = vadd.f32 %v1496_v17, %v1456_v36  ;;  %v1441_v6 = vpop.f32.mrf.mxu2  ;;  %v1581_v3 = vshll.u32 %v1540_v60, 16  ;;  %v1130_v36 = vadd.f32 %v4129_v59, %v1082_v24 }
 0x18e   : > { %v1457_v42 = vadd.f32 %v1441_v6, %v1405_v0  ;;  %v1406_v33 = vadd.f32 %v1392_v31, %v1345_v9  ;;  %v2013_v14 = vunpack.c.l.b16 %v1982_v25  ;;  %v1734_v17 = vsel %vm3439_vm4, %v1729_v12, %v1733_v45  ;;  %v1668_v6 = vld [vmem:[#allocation2 + $0x18] sm:$0xf] }
 0x18f   : > { %v1580_v13 = vrot.slane %v1578_v63, 7  ;;  %v1525_v30 = vadd.f32 %v4197_v49, %v1513_v43  ;;  %v1191_v0 = vadd.f32 %v4139_v56, %v1130_v36  ;;  %v1336_v36 = vpop.f32.mrf.mxu0 }
 0x191   : > { %v1583_v21 = vor.u32 %v1581_v3, %v1580_v13  ;;  %v1584_v23 = vrot.slane %v1580_v13, 4  ;;  %v1533_v41 = vmax.f32 %v1525_v30, 0.0  ;;  %v1190_v30 = vadd.f32 %v4133_v4, %v1129_v34 }
 0x192   : > { %v1835_v34 = vunpack.c.l.b16 %v1734_v17 }
 0x193   : > { %v1663_v18 = vsel %vm4218_vm15, %v1583_v21, %v1662_v54  ;;  %v1666_v58 = vsel %vm4229_vm1, %v1584_v23, %v1665_v26  ;;  %v1541_v48 = vpack.c.bf16 %v1533_v41, %v1533_v41  ;;  %v3279_v57 = vld [vmem:[#allocation2 + $0x4] sm:$0xf0] }
 0x194   : > { %v1956_v47 = vld [vmem:[#allocation2 + $0x8] sm:$0xe]  ;;  %1664 = vst [vmem:[#allocation2 + $0x10] sm:$0xf] %v1663_v18  ;;  %v1498_v37 = vpop.f32.mrf.mxu3  ;;  %v3168_v20 = vor.u32 %v3279_v57, %v3167_v11  ;;  %v1714_v52 = vld [vmem:[#allocation2 + $0xc] sm:$0x1]  ;;  %v1394_v59 = vpop.f32.mrf.mxu1  ;;  %v1242_v11 = vadd.f32 %v4144_v39, %v1190_v30 }
 0x195   : > { %v3186_v16 = vrot.slane %v1956_v47, 9  ;;  %1667 = vst [vmem:[#allocation2 + $0x14] sm:$0x1] %v1666_v58  ;;  %v1586_v22 = vshrl.u32 %v1541_v48, 16  ;;  %v1514_v27 = vadd.f32 %v1498_v37, %v1457_v42  ;;  %v1444_v60 = vpop.f32.mrf.mxu2  ;;  %v1985_v46 = vrot.slane %v1714_v52, 5 }
 0x196   : > { %v1589_v55 = vshll.u32 %v1541_v48, 16  ;;  %3181 = vmatmul.msk.bf16.vlgmr.msrb.gmra.mxu1 %vm449_vm3, %v3168_v20  ;;  %v1705_v19 = vld [vmem:[#allocation2 + $0x8] sm:$0xf]  ;;  %v1458_v50 = vadd.f32 %v1444_v60, %v1406_v33  ;;  %v1745_v1 = vshll.u32 %v1714_v52, 16  ;;  %v1407_v48 = vadd.f32 %v1394_v59, %v1346_v8  ;;  %v1674_v60 = vld [vmem:[#allocation2 + $0x20] sm:$0xf] }
 0x197   : > { %v1588_v29 = vrot.slane %v1586_v22, 7  ;;  %v1526_v63 = vadd.f32 %v4197_v49, %v1514_v27  ;;  %v1986_v10 = vsel %vm3541_vm7, %v3186_v16, %v1985_v46  ;;  %v1736_v43 = vshrl.u32 %v1705_v19, 16  ;;  %v3201_v23 = vld [vmem:[#allocation2 + $0x8] sm:$0xf]  ;;  %v1677_v46 = vld [vmem:[#allocation2 + $0x24] sm:$0x1] }
 0x198   : > { %v2014_v15 = vunpack.c.l.b16 %v1986_v10  ;;  %v1739_v31 = vshll.u32 %v1705_v19, 16  ;;  %v1747_v57 = vrot.slane %v1745_v1, 5  ;;  %v1299_v22 = vadd.f32 %v4157_v44, %v1242_v11 }
 0x199   : > { %v1591_v51 = vor.u32 %v1589_v55, %v1588_v29  ;;  %v1592_v7 = vrot.slane %v1588_v29, 4  ;;  %v1534_v13 = vmax.f32 %v1526_v63, 0.0  ;;  %v1738_v3 = vrot.slane %v1736_v43, 4 }
 0x19a   : > { %v2021_v24 = vpack.c.b16 %v2014_v15, %v2013_v14  ;;  %v1741_v28 = vrot.slane %v1739_v31, 5  ;;  %v1243_v27 = vadd.f32 %v4161_v61, %v1191_v0  ;;  %v1347_v1 = vadd.f32 %v1336_v36, %v1299_v22 }
 0x19b   : > { %v1669_v54 = vsel %vm4218_vm15, %v1591_v51, %v1668_v6  ;;  %v1672_v26 = vsel %vm4229_vm1, %v1592_v7, %v1671_v2  ;;  %v1542_v21 = vpack.c.bf16 %v1534_v13, %v1534_v13  ;;  %v3283_v41 = vld [vmem:[#allocation2 + $0xc] sm:$0xf0] }
 0x19c   : > { %v1957_v42 = vld [vmem:[#allocation2 + $0x10] sm:$0xe]  ;;  %1670 = vst [vmem:[#allocation2 + $0x18] sm:$0xf] %v1669_v54  ;;  %v1501_v12 = vpop.f32.mrf.mxu3  ;;  %3194 = vmatmul.msk.bf16.vlgmr.msrb.gmra.mxu2 %vm449_vm3, %v2021_v24  ;;  %v3202_v4 = vor.u32 %v3283_v41, %v3201_v23  ;;  %v1742_v56 = vor.u32 %v1741_v28, %v1738_v3  ;;  %v4274_v45 = vld [vmem:[#allocation2 + $0x14] sm:$0x1]  ;;  %v1397_v14 = vpop.f32.mrf.mxu1  ;;  %v1300_v0 = vadd.f32 %v4176_v32, %v1243_v27 }
 0x19d   : > { %1673 = vst [vmem:[#allocation2 + $0x1c] sm:$0x1] %v1672_v26  ;;  %v1594_v18 = vshrl.u32 %v1542_v21, 16  ;;  %v1515_v58 = vadd.f32 %v1501_v12, %v1458_v50  ;;  %v1446_v47 = vpop.f32.mrf.mxu2  ;;  %v1706_v25 = vld [vmem:[#allocation2 + $0x10] sm:$0xf]  ;;  %v1597_v9 = vshll.u32 %v1542_v21, 16  ;;  %v1408_v21 = vadd.f32 %v1397_v14, %v1347_v1 }
 0x19e   : > { %3215 = vmatmul.msk.bf16.vlgmr.msrb.gmra.mxu3 %vm449_vm3, %v3202_v4  ;;  %v1743_v39 = vrot.slane %v1742_v56, 4  ;;  %v3187_v5 = vrot.slane %v1957_v42, 9  ;;  %v1989_v37 = vrot.slane %v4274_v45, 5  ;;  %v1750_v16 = vshrl.u32 %v1706_v25, 16  ;;  %v3171_v50 = vld [vmem:[#allocation2 + $0x10] sm:$0xf]  ;;  %v1338_v56 = vpop.f32.mrf.mxu0 }
 0x19f   : > { %v1596_v20 = vrot.slane %v1594_v18, 7  ;;  %v1527_v52 = vadd.f32 %v4197_v49, %v1515_v58  ;;  %v1753_v62 = vshll.u32 %v1706_v25, 16  ;;  %v1459_v33 = vadd.f32 %v1446_v47, %v1407_v48  ;;  %v1683_v18 = vld [vmem:[#allocation2 + $0x2c] sm:$0x1] }
 0x1a0   : > { %v1748_v55 = vsel %vm3439_vm4, %v1743_v39, %v1747_v57  ;;  %v1990_v63 = vsel %vm3541_vm7, %v3187_v5, %v1989_v37  ;;  %v1752_v10 = vrot.slane %v1750_v16, 4  ;;  %v1759_v42 = vshll.u32 %v4274_v45, 16 }
 0x1a1   : > { %v1599_v59 = vor.u32 %v1597_v9, %v1596_v20  ;;  %v1600_v19 = vrot.slane %v1596_v20, 4  ;;  %v1535_v17 = vmax.f32 %v1527_v52, 0.0  ;;  %v1836_v29 = vunpack.c.l.b16 %v1748_v55 }
 0x1a2   : > { %v1755_v43 = vrot.slane %v1753_v62, 5  ;;  %v2015_v23 = vunpack.c.l.b16 %v1990_v63  ;;  %v1761_v37 = vrot.slane %v1759_v42, 5  ;;  %v1348_v16 = vadd.f32 %v1338_v56, %v1300_v0 }
 0x1a3   : > { %v1675_v44 = vsel %vm4218_vm15, %v1599_v59, %v1674_v60  ;;  %v1678_v61 = vsel %vm4229_vm1, %v1600_v19, %v1677_v46  ;;  %v1543_v6 = vpack.c.bf16 %v1535_v17, %v1535_v17  ;;  %v1843_v2 = vpack.c.b16 %v1836_v29, %v1835_v34  ;;  %v3280_v15 = vld [vmem:[#allocation2 + $0x14] sm:$0xf0]  ;;  %v1680_v34 = vld [vmem:[#allocation2 + $0x28] sm:$0xf] }
 0x1a4   : > { %v1958_v31 = vld [vmem:[#allocation2 + $0x18] sm:$0xe]  ;;  %1676 = vst [vmem:[#allocation2 + $0x20] sm:$0xf] %v1675_v44  ;;  %v1503_v51 = vpop.f32.mrf.mxu3  ;;  %v3172_v7 = vor.u32 %v3280_v15, %v3171_v50  ;;  %v1716_v13 = vld [vmem:[#allocation2 + $0x1c] sm:$0x1]  ;;  %v1756_v30 = vor.u32 %v1755_v43, %v1752_v10  ;;  %v1399_v45 = vpop.f32.mrf.mxu1 }
 0x1a5   : > { %v3188_v3 = vrot.slane %v1958_v31, 9  ;;  %1679 = vst [vmem:[#allocation2 + $0x24] sm:$0x1] %v1678_v61  ;;  %v1602_v24 = vshrl.u32 %v1543_v6, 16  ;;  %3161 = vmatmul.msk.bf16.vlgmr.msra.gmra.mxu0 %vm449_vm3, %v1843_v2  ;;  %v1516_v28 = vadd.f32 %v1503_v51, %v1459_v33  ;;  %v1449_v8 = vpop.f32.mrf.mxu2  ;;  %v1993_v54 = vrot.slane %v1716_v13, 5 }
 0x1a6   : > { %v1605_v26 = vshll.u32 %v1543_v6, 16  ;;  %3182 = vmatmul.msk.bf16.gmra.mxu1 %vm449_vm3, %v3172_v7  ;;  %v1707_v41 = vld [vmem:[#allocation2 + $0x18] sm:$0xf]  ;;  %v1460_v58 = vadd.f32 %v1449_v8, %v1408_v21  ;;  %v1757_v57 = vrot.slane %v1756_v30, 4  ;;  %v1773_v52 = vshll.u32 %v1716_v13, 16 }
 0x1a7   : > { %v1604_v11 = vrot.slane %v1602_v24, 7  ;;  %v1528_v12 = vadd.f32 %v4197_v49, %v1516_v28  ;;  %v1994_v32 = vsel %vm3541_vm7, %v3188_v3, %v1993_v54  ;;  %v1764_v4 = vshrl.u32 %v1707_v41, 16  ;;  %v3205_v60 = vld [vmem:[#allocation2 + $0x18] sm:$0xf]  ;;  %v1686_v7 = vld [vmem:[#allocation2 + $0x30] sm:$0xf] }
 0x1a8   : > { %v2016_v48 = vunpack.c.l.b16 %v1994_v32  ;;  %v1767_v47 = vshll.u32 %v1707_v41, 16  ;;  %v1409_v63 = vadd.f32 %v1399_v45, %v1348_v16  ;;  %v1762_v10 = vsel %vm3439_vm4, %v1757_v57, %v1761_v37  ;;  %v1689_v13 = vld [vmem:[#allocation2 + $0x34] sm:$0x1] }
 0x1a9   : > { %v1607_v25 = vor.u32 %v1605_v26, %v1604_v11  ;;  %v1608_v36 = vrot.slane %v1604_v11, 4  ;;  %v1536_v9 = vmax.f32 %v1528_v12, 0.0  ;;  %v1766_v39 = vrot.slane %v1764_v4, 4 }
 0x1aa   : > { %v2022_v5 = vpack.c.b16 %v2016_v48, %v2015_v23  ;;  %v1769_v20 = vrot.slane %v1767_v47, 5  ;;  %v1775_v61 = vrot.slane %v1773_v52, 5  ;;  %v1837_v30 = vunpack.c.l.b16 %v1762_v10  ;;  %v1692_v52 = vld [vmem:[#allocation2 + $0x38] sm:$0xf] }
 0x1ab   : > { %v1681_v62 = vsel %vm4218_vm15, %v1607_v25, %v1680_v34  ;;  %v1684_v22 = vsel %vm4229_vm1, %v1608_v36, %v1683_v18  ;;  %v1544_v27 = vpack.c.bf16 %v1536_v9, %v1536_v9  ;;  %v3284_v46 = vld [vmem:[#allocation2 + $0x1c] sm:$0xf0] }
 0x1ac   : > { %v1959_v55 = vld [vmem:[#allocation2 + $0x20] sm:$0xe]  ;;  %1682 = vst [vmem:[#allocation2 + $0x28] sm:$0xf] %v1681_v62  ;;  %v1506_v33 = vpop.f32.mrf.mxu3  ;;  %3195 = vmatmul.msk.bf16.gmra.mxu2 %vm449_vm3, %v2022_v5  ;;  %v3206_v14 = vor.u32 %v3284_v46, %v3205_v60  ;;  %v1770_v59 = vor.u32 %v1769_v20, %v1766_v39  ;;  %v1717_v19 = vld [vmem:[#allocation2 + $0x24] sm:$0x1] }
 0x1ad   : > { %1685 = vst [vmem:[#allocation2 + $0x2c] sm:$0x1] %v1684_v22  ;;  %v1610_v17 = vshrl.u32 %v1544_v27, 16  ;;  %v1517_v29 = vadd.f32 %v1506_v33, %v1460_v58  ;;  %v1451_v43 = vpop.f32.mrf.mxu2  ;;  %v3189_v6 = vrot.slane %v1959_v55, 9  ;;  %v1997_v2 = vrot.slane %v1717_v19, 5 }
 0x1ae   : > { %3216 = vmatmul.msk.bf16.gmra.mxu3 %vm449_vm3, %v3206_v14  ;;  %v1771_v44 = vrot.slane %v1770_v59, 4  ;;  %v1708_v50 = vld [vmem:[#allocation2 + $0x20] sm:$0xf]  ;;  %v1613_v31 = vshll.u32 %v1544_v27, 16  ;;  %v1461_v0 = vadd.f32 %v1451_v43, %v1409_v63  ;;  %v1787_v25 = vshll.u32 %v1717_v19, 16 }
 0x1af   : > { %v1612_v15 = vrot.slane %v1610_v17, 7  ;;  %v1529_v1 = vadd.f32 %v4197_v49, %v1517_v29  ;;  %v1778_v51 = vshrl.u32 %v1708_v50, 16  ;;  %v1781_v24 = vshll.u32 %v1708_v50, 16  ;;  %v3175_v4 = vld [vmem:[#allocation2 + $0x20] sm:$0xf] }
 0x1b0   : > { %v1776_v3 = vsel %vm3439_vm4, %v1771_v44, %v1775_v61  ;;  %v1998_v21 = vsel %vm3541_vm7, %v3189_v6, %v1997_v2  ;;  %v3232_v27 = vld [vmem:[%s4665_s3 + $0xa] sm:$0x3]  ;;  %v1695_v60 = vld [vmem:[#allocation2 + $0x3c] sm:$0x1]  ;;  %v1789_v33 = vrot.slane %v1787_v25, 5 }
 0x1b1   : > { %v1615_v28 = vor.u32 %v1613_v31, %v1612_v15  ;;  %v1616_v8 = vrot.slane %v1612_v15, 4  ;;  %v1537_v54 = vmax.f32 %v1529_v1, 0.0  ;;  %v1838_v26 = vunpack.c.l.b16 %v1776_v3  ;;  %v4325_v61 = vld [vmem:[#allocation2 + $0x10] sm:$0xf]  ;;  %v3258_v1 = vld [vmem:[%s4665_s3 + $0xe] sm:$0x3] }
 0x1b2   : > { %v1780_v23 = vrot.slane %v1778_v51, 4  ;;  %v1783_v41 = vrot.slane %v1781_v24, 5  ;;  %v2017_v45 = vunpack.c.l.b16 %v1998_v21  ;;  %v2436_v44 = vsel %vm462_vm0, %v3232_v27, 0 }
 0x1b3   : > { %v1687_v42 = vsel %vm4218_vm15, %v1615_v28, %v1686_v7  ;;  %v1690_v11 = vsel %vm4229_vm1, %v1616_v8, %v1689_v13  ;;  %v1545_v12 = vpack.c.bf16 %v1537_v54, %v1537_v54  ;;  %v1844_v32 = vpack.c.b16 %v1838_v26, %v1837_v30  ;;  %v3281_v56 = vld [vmem:[#allocation2 + $0x24] sm:$0xf0]  ;;  %2445 = vmatpush.bf16.msra.mxu1 %v2436_v44  ;;  %v4340_v28 = vld [vmem:[#allocation2 + $0x14] sm:$0x1]  ;;  %v4342_v8 = vld [vmem:[#allocation2 + $0x10] sm:$0xe] }
 0x1b4   : > { %v1960_v34 = vld [vmem:[#allocation2 + $0x28] sm:$0xe]  ;;  %1688 = vst [vmem:[#allocation2 + $0x30] sm:$0xf] %v1687_v42  ;;  %v1508_v18 = vpop.f32.mrf.mxu3  ;;  %v3176_v58 = vor.u32 %v3281_v56, %v3175_v4  ;;  %v1718_v48 = vld [vmem:[#allocation2 + $0x2c] sm:$0x1]  ;;  %v1784_v47 = vor.u32 %v1783_v41, %v1780_v23 }
 0x1b5   : > { %v3190_v57 = vrot.slane %v1960_v34, 9  ;;  %1691 = vst [vmem:[#allocation2 + $0x34] sm:$0x1] %v1690_v11  ;;  %v1618_v36 = vshrl.u32 %v1545_v12, 16  ;;  %3162 = vmatmul.msk.bf16.gmra.mxu0 %vm449_vm3, %v1844_v32  ;;  %v1518_v9 = vadd.f32 %v1508_v18, %v1461_v0  ;;  %v2001_v39 = vrot.slane %v1718_v48, 5 }
 0x1b6   : > { %v1621_v5 = vshll.u32 %v1545_v12, 16  ;;  %3183 = vmatmul.msk.bf16.gmra.mxu1 %vm449_vm3, %v3176_v58  ;;  %v1709_v37 = vld [vmem:[#allocation2 + $0x28] sm:$0xf]  ;;  %v1785_v55 = vrot.slane %v1784_v47, 4  ;;  %v1801_v43 = vshll.u32 %v1718_v48, 16  ;;  %v2713_v23 = vsel %vm462_vm0, %v3258_v1, 0 }
 0x1b7   : > { %v1620_v20 = vrot.slane %v1618_v36, 7  ;;  %v1530_v16 = vadd.f32 %v4197_v49, %v1518_v9  ;;  %v2002_v62 = vsel %vm3541_vm7, %v3190_v57, %v2001_v39  ;;  %v1792_v22 = vshrl.u32 %v1709_v37, 16  ;;  %v3237_v49 = vld [vmem:[%s4665_s3 + $0xc] sm:$0x3]  ;;  %v3209_v15 = vld [vmem:[#allocation2 + $0x28] sm:$0xf]  ;;  %2722 = vmatpush.bf16.msra.mxu3 %v2713_v23 }
 0x1b8   : > { %v2018_v46 = vunpack.c.l.b16 %v2002_v62  ;;  %v1795_v14 = vshll.u32 %v1709_v37, 16  ;;  %v2519_v3 = vsel %vm462_vm0, %v3237_v49, 0  ;;  %v1790_v0 = vsel %vm3439_vm4, %v1785_v55, %v1789_v33  ;;  %v1698_v12 = vld [vmem:[#allocation2 + $0x40] sm:$0xf]  ;;  %v1701_v56 = vld [vmem:[#allocation2 + $0x44] sm:$0x1] }
 0x1b9   : > { %v1623_v59 = vor.u32 %v1621_v5, %v1620_v20  ;;  %v1624_v19 = vrot.slane %v1620_v20, 4  ;;  %v1538_v17 = vmax.f32 %v1530_v16, 0.0  ;;  %v1794_v29 = vrot.slane %v1792_v22, 4  ;;  %2528 = vmatpush.bf16.msra.mxu2 %v2519_v3  ;;  %v2560_v57 = vld [vmem:[#allocation2 + $0x18] sm:$0xf] }
 0x1ba   : > { %v2023_v63 = vpack.c.b16 %v2018_v46, %v2017_v45  ;;  %v1797_v10 = vrot.slane %v1795_v14, 5  ;;  %v1803_v26 = vrot.slane %v1801_v43, 5  ;;  %v2575_v41 = vshrl.u32 %v4325_v61, 16  ;;  %v2353_v43 = vld [vmem:[#allocation2 + $0x8] sm:$0xe] }
 0x1bb   : > { %v1693_v6 = vsel %vm4218_vm15, %v1623_v59, %v1692_v52  ;;  %v1696_v2 = vsel %vm4229_vm1, %v1624_v19, %v1695_v60  ;;  %v1546_v50 = vpack.c.bf16 %v1538_v17, %v1538_v17  ;;  %v3285_v31 = vld [vmem:[#allocation2 + $0x2c] sm:$0xf0]  ;;  %v1839_v18 = vunpack.c.l.b16 %v1790_v0  ;;  %v4357_v59 = vld [vmem:[#allocation2 + $0xc] sm:$0x1]  ;;  %v4369_v23 = vld [vmem:[#allocation2 + $0x14] sm:$0x1] }
 0x1bc   : > { %1694 = vst [vmem:[#allocation2 + $0x38] sm:$0xf] %v1693_v6  ;;  %3196 = vmatmul.msk.bf16.gmra.mxu2 %vm449_vm3, %v2023_v63  ;;  %v3210_v51 = vor.u32 %v3285_v31, %v3209_v15  ;;  %v1798_v7 = vor.u32 %v1797_v10, %v1794_v29  ;;  %v1961_v13 = vld [vmem:[#allocation2 + $0x30] sm:$0xe]  ;;  %v4338_v24 = vld [vmem:[#allocation2 + $0x34] sm:$0x1] }
 0x1bd   : > { %1697 = vst [vmem:[#allocation2 + $0x3c] sm:$0x1] %v1696_v2  ;;  %v1626_v30 = vshrl.u32 %v1546_v50, 16  ;;  %v1710_v21 = vld [vmem:[#allocation2 + $0x30] sm:$0xf]  ;;  %v1629_v11 = vshll.u32 %v1546_v50, 16 }
 0x1be   : > { %3217 = vmatmul.msk.bf16.gmra.mxu3 %vm449_vm3, %v3210_v51  ;;  %v1799_v54 = vrot.slane %v1798_v7, 4  ;;  %v1806_v32 = vshrl.u32 %v1710_v21, 16  ;;  %v1809_v4 = vshll.u32 %v1710_v21, 16  ;;  %v3191_v58 = vrot.slane %v1961_v13, 9  ;;  %v3179_v39 = vld [vmem:[#allocation2 + $0x30] sm:$0xf] }
 0x1bf   : > { %v1628_v42 = vrot.slane %v1626_v30, 7  ;;  %v2005_v48 = vrot.slane %v4338_v24, 5  ;;  %v3225_v45 = vrot.slane %v4342_v8, 9  ;;  %v2383_v37 = vrot.slane %v4340_v28, 5  ;;  %v2159_v7 = vld [vmem:[#allocation2 + $0x8] sm:$0xf] }
 0x1c0   : > { %v1804_v34 = vsel %vm3439_vm4, %v1799_v54, %v1803_v26  ;;  %v1808_v9 = vrot.slane %v1806_v32, 4  ;;  %v1811_v5 = vrot.slane %v1809_v4, 5  ;;  %v2578_v20 = vshll.u32 %v4325_v61, 16 }
 0x1c1   : > { %v1631_v47 = vor.u32 %v1629_v11, %v1628_v42  ;;  %v1632_v25 = vrot.slane %v1628_v42, 4  ;;  %v1840_v36 = vunpack.c.l.b16 %v1804_v34  ;;  %v2589_v60 = vshrl.u32 %v2560_v57, 16 }
 0x1c2   : > { %v1812_v14 = vor.u32 %v1811_v5, %v1808_v9  ;;  %v2577_v19 = vrot.slane %v2575_v41, 4  ;;  %v2006_v40 = vsel %vm3541_vm7, %v3191_v58, %v2005_v48  ;;  %v1815_v29 = vshll.u32 %v4338_v24, 16  ;;  %v2161_v24 = vld [vmem:[#allocation2 + $0x10] sm:$0xf]  ;;  %v4371_v41 = vld [vmem:[#allocation2 + $0x1c] sm:$0x1] }
 0x1c3   : > { %v1699_v52 = vsel %vm4218_vm15, %v1631_v47, %v1698_v12  ;;  %v1702_v16 = vsel %vm4229_vm1, %v1632_v25, %v1701_v56  ;;  %v1845_v62 = vpack.c.b16 %v1840_v36, %v1839_v18  ;;  %v3282_v22 = vld [vmem:[#allocation2 + $0x34] sm:$0xf0]  ;;  %v2580_v44 = vrot.slane %v2578_v20, 5  ;;  %v3271_v56 = vld [vmem:[%s4665_s3 + $0x10] sm:$0x3] }
 0x1c4   : > { %v1962_v27 = vld [vmem:[#allocation2 + $0x38] sm:$0xe]  ;;  %1700 = vst [vmem:[#allocation2 + $0x40] sm:$0xf] %v1699_v52  ;;  %v3180_v46 = vor.u32 %v3282_v22, %v3179_v39  ;;  %v1720_v55 = vld [vmem:[#allocation2 + $0x3c] sm:$0x1]  ;;  %v2019_v15 = vunpack.c.l.b16 %v2006_v40  ;;  %v2384_v21 = vsel %vm3541_vm7, %v3225_v45, %v2383_v37 }
 0x1c5   : > { %v3192_v33 = vrot.slane %v1962_v27, 9  ;;  %1703 = vst [vmem:[#allocation2 + $0x44] sm:$0x1] %v1702_v16  ;;  %3163 = vmatmul.msk.bf16.gmra.mxu0 %vm449_vm3, %v1845_v62  ;;  %v2009_v53 = vrot.slane %v1720_v55, 5  ;;  %v1711_v17 = vld [vmem:[#allocation2 + $0x38] sm:$0xf]  ;;  %v2581_v32 = vor.u32 %v2580_v44, %v2577_v19  ;;  %v2412_v20 = vunpack.c.l.b16 %v2384_v21 }
 0x1c6   : > { %3184 = vmatmul.msk.bf16.gmra.mxu1 %vm449_vm3, %v3180_v46  ;;  %v1820_v49 = vshrl.u32 %v1711_v17, 16  ;;  %v1823_v63 = vshll.u32 %v1711_v17, 16  ;;  %v1829_v10 = vshll.u32 %v1720_v55, 16  ;;  %v1813_v6 = vrot.slane %v1812_v14, 4  ;;  %v3213_v54 = vld [vmem:[#allocation2 + $0x38] sm:$0xf] }
 0x1c7   : > { %v2010_v61 = vsel %vm3541_vm7, %v3192_v33, %v2009_v53  ;;  %v2591_v2 = vrot.slane %v2589_v60, 4  ;;  %v2592_v50 = vshll.u32 %v2560_v57, 16  ;;  %v1817_v13 = vrot.slane %v1815_v29, 5  ;;  %v2564_v19 = vld [vmem:[#allocation2 + $0x28] sm:$0xf] }
 0x1c8   : > { %v2020_v31 = vunpack.c.l.b16 %v2010_v61  ;;  %v1822_v1 = vrot.slane %v1820_v49, 4  ;;  %v1825_v51 = vrot.slane %v1823_v63, 5  ;;  %v3224_v3 = vrot.slane %v2353_v43, 9  ;;  %v4387_v40 = vld [vmem:[#allocation2 + $0x24] sm:$0x1] }
 0x1c9   : > { %v2379_v30 = vrot.slane %v4357_v59, 5  ;;  %v2594_v0 = vrot.slane %v2592_v50, 5  ;;  %v1818_v11 = vsel %vm3439_vm4, %v1813_v6, %v1817_v13  ;;  %v1831_v12 = vrot.slane %v1829_v10, 5  ;;  %v2355_v53 = vld [vmem:[#allocation2 + $0x18] sm:$0xe] }
 0x1ca   : > { %v2024_v8 = vpack.c.b16 %v2020_v31, %v2019_v15  ;;  %v1826_v26 = vor.u32 %v1825_v51, %v1822_v1  ;;  %v2190_v58 = vshrl.u32 %v2161_v24, 16  ;;  %v2193_v48 = vshll.u32 %v2161_v24, 16  ;;  %v2356_v17 = vld [vmem:[#allocation2 + $0x20] sm:$0xe]  ;;  %v4393_v43 = vld [vmem:[#allocation2 + $0x1c] sm:$0x1] }
 0x1cb   : > { %v3286_v42 = vld [vmem:[#allocation2 + $0x3c] sm:$0xf0]  ;;  %v2595_v4 = vor.u32 %v2594_v0, %v2591_v2  ;;  %v2380_v57 = vsel %vm3541_vm7, %v3224_v3, %v2379_v30  ;;  %v2584_v47 = vshll.u32 %v4369_v23, 16  ;;  %v2176_v25 = vshrl.u32 %v2159_v7, 16  ;;  %v3287_v15 = vld [vmem:[#allocation2 + $0x14] sm:$0xf0] }
 0x1cc   : > { %3197 = vmatmul.msk.bf16.gmra.mxu2 %vm449_vm3, %v2024_v8  ;;  %v3214_v34 = vor.u32 %v3286_v42, %v3213_v54  ;;  %v1827_v18 = vrot.slane %v1826_v26, 4  ;;  %v2598_v9 = vshll.u32 %v4371_v41, 16  ;;  %v2179_v39 = vshll.u32 %v2159_v7, 16  ;;  %v2562_v44 = vld [vmem:[#allocation2 + $0x20] sm:$0xf] }
 0x1cd   : > { %v2835_v5 = vsel %vm462_vm0, %v3271_v56, 0  ;;  %v1841_v45 = vunpack.c.l.b16 %v1818_v11  ;;  %v2582_v52 = vrot.slane %v2581_v32, 4  ;;  %v2596_v16 = vrot.slane %v2595_v4, 4  ;;  %v3240_v24 = vld [vmem:[#allocation2 + $0x10] sm:$0xf] }
 0x1ce   : > { %3218 = vmatmul.msk.bf16.gmra.mxu3 %vm449_vm3, %v3214_v34  ;;  %v1832_v36 = vsel %vm3439_vm4, %v1827_v18, %v1831_v12  ;;  %2844 = vmatpush.bf16.msra.mxu0 %v2835_v5  ;;  %v2192_v62 = vrot.slane %v2190_v58, 4  ;;  %v2195_v22 = vrot.slane %v2193_v48, 5  ;;  %v2411_v60 = vunpack.c.l.b16 %v2380_v57  ;;  %v2165_v21 = vld [vmem:[#allocation2 + $0x20] sm:$0xf]  ;;  %v4405_v34 = vld [vmem:[#allocation2 + $0x2c] sm:$0x1] }
 0x1cf   : > { %v1842_v37 = vunpack.c.l.b16 %v1832_v36  ;;  %v2586_v46 = vrot.slane %v2584_v47, 5  ;;  %v2600_v55 = vrot.slane %v2598_v9, 5  ;;  %v2178_v33 = vrot.slane %v2176_v25, 4  ;;  %v2163_v48 = vld [vmem:[#allocation2 + $0x18] sm:$0xf] }
 0x1d0   : > { %v2181_v14 = vrot.slane %v2179_v39, 5  ;;  %v2419_v29 = vpack.c.b16 %v2412_v20, %v2411_v60  ;;  %v2196_v10 = vor.u32 %v2195_v22, %v2192_v62  ;;  %v2185_v61 = vshll.u32 %v4357_v59, 16  ;;  %v4410_v47 = vld [vmem:[#allocation2 + $0x24] sm:$0x1]  ;;  %v2566_v5 = vld [vmem:[#allocation2 + $0x30] sm:$0xf] }
 0x1d1   : > { %v1846_v27 = vpack.c.b16 %v1842_v37, %v1841_v45  ;;  %v2587_v49 = vsel %vm3439_vm4, %v2582_v52, %v2586_v46  ;;  %v2601_v63 = vsel %vm3439_vm4, %v2596_v16, %v2600_v55  ;;  %v2199_v6 = vshll.u32 %v4340_v28, 16  ;;  %v4415_v37 = vld [vmem:[#allocation2 + $0x24] sm:$0xf0]  ;;  %v2568_v46 = vld [vmem:[#allocation2 + $0x38] sm:$0xf] }
 0x1d2   : > { %v2617_v2 = vshrl.u32 %v2564_v19, 16  ;;  %v2620_v50 = vshll.u32 %v2564_v19, 16  ;;  %v2182_v31 = vor.u32 %v2181_v14, %v2178_v33  ;;  %v3226_v1 = vrot.slane %v2355_v53, 9  ;;  %v3244_v55 = vld [vmem:[#allocation2 + $0x20] sm:$0xf] }
 0x1d3   : > { %v3227_v51 = vrot.slane %v2356_v17, 9  ;;  %v2391_v7 = vrot.slane %v4387_v40, 5  ;;  %v2689_v13 = vunpack.c.l.b16 %v2601_v63  ;;  %v2387_v3 = vrot.slane %v4393_v43, 5 }
 0x1d4   : > { %v2603_v30 = vshrl.u32 %v2562_v44, 16  ;;  %v2606_v0 = vshll.u32 %v2562_v44, 16  ;;  %v2197_v8 = vrot.slane %v2196_v10, 4  ;;  %v2619_v59 = vrot.slane %v2617_v2, 4  ;;  %v2167_v2 = vld [vmem:[#allocation2 + $0x28] sm:$0xf] }
 0x1d5   : > { %3164 = vmatmul.msk.bf16.gmra.mxu0 %vm449_vm3, %v1846_v27  ;;  %v2622_v54 = vrot.slane %v2620_v50, 5  ;;  %v3241_v28 = vor.u32 %v3287_v15, %v3240_v24  ;;  %v2688_v26 = vunpack.c.l.b16 %v2587_v49  ;;  %v2183_v42 = vrot.slane %v2182_v31, 4  ;;  %v2169_v24 = vld [vmem:[#allocation2 + $0x30] sm:$0xf] }
 0x1d6   : > { %3233 = vmatmul.msk.bf16.vlgmr.msra.gmra.mxu1 %vm449_vm3, %v2419_v29  ;;  %v2187_v11 = vrot.slane %v2185_v61, 5  ;;  %v2201_v12 = vrot.slane %v2199_v6, 5  ;;  %v2392_v32 = vsel %vm3541_vm7, %v3227_v51, %v2391_v7  ;;  %v2388_v56 = vsel %vm3541_vm7, %v3226_v1, %v2387_v3  ;;  %v2357_v1 = vld [vmem:[#allocation2 + $0x28] sm:$0xe]  ;;  %v4422_v3 = vld [vmem:[#allocation2 + $0x2c] sm:$0x1] }
 0x1d7   : > { %v2696_v4 = vpack.c.b16 %v2689_v13, %v2688_v26  ;;  %v2605_v18 = vrot.slane %v2603_v30, 4  ;;  %v2608_v58 = vrot.slane %v2606_v0, 5  ;;  %v2623_v25 = vor.u32 %v2622_v54, %v2619_v59 }
 0x1d8   : > { %v2202_v57 = vsel %vm3439_vm4, %v2197_v8, %v2201_v12  ;;  %v2218_v36 = vshrl.u32 %v2165_v21, 16  ;;  %v2221_v9 = vshll.u32 %v2165_v21, 16  ;;  %v2414_v39 = vunpack.c.l.b16 %v2392_v32  ;;  %v2358_v8 = vld [vmem:[#allocation2 + $0x30] sm:$0xe]  ;;  %v4428_v12 = vld [vmem:[#allocation2 + $0x34] sm:$0x1] }
 0x1d9   : > { %v2188_v45 = vsel %vm3439_vm4, %v2183_v42, %v2187_v11  ;;  %v2626_v20 = vshll.u32 %v4405_v34, 16  ;;  %v2204_v52 = vshrl.u32 %v2163_v48, 16  ;;  %v2207_v16 = vshll.u32 %v2163_v48, 16 }
 0x1da   : > { %v2290_v62 = vunpack.c.l.b16 %v2202_v57  ;;  %v2413_v22 = vunpack.c.l.b16 %v2388_v56  ;;  %v2609_v27 = vor.u32 %v2608_v58, %v2605_v18  ;;  %v2612_v60 = vshll.u32 %v4410_v47, 16  ;;  %v4433_v18 = vld [vmem:[#allocation2 + $0x3c] sm:$0x1] }
 0x1db   : > { %v2624_v33 = vrot.slane %v2623_v25, 4  ;;  %v2220_v14 = vrot.slane %v2218_v36, 4  ;;  %v2223_v19 = vrot.slane %v2221_v9, 5  ;;  %v2631_v53 = vshrl.u32 %v2566_v5, 16  ;;  %v4435_v9 = vld [vmem:[#allocation2 + $0x34] sm:$0x1] }
 0x1dc   : > { %3254 = vmatmul.msk.bf16.vlgmr.msra.gmra.mxu2 %vm449_vm3, %v3241_v28  ;;  %v2289_v17 = vunpack.c.l.b16 %v2188_v45  ;;  %v2420_v29 = vpack.c.b16 %v2414_v39, %v2413_v22  ;;  %v3245_v49 = vor.u32 %v4415_v37, %v3244_v55  ;;  %v2634_v63 = vshll.u32 %v2566_v5, 16  ;;  %v4441_v22 = vld [vmem:[#allocation2 + $0x34] sm:$0xf0] }
 0x1dd   : > { %v2628_v10 = vrot.slane %v2626_v20, 5  ;;  %v2206_v44 = vrot.slane %v2204_v52, 4  ;;  %v2209_v61 = vrot.slane %v2207_v16, 5  ;;  %v2645_v6 = vshrl.u32 %v2568_v46, 16 }
 0x1de   : > { %3259 = vmatmul.msk.bf16.vlgmr.msra.gmra.mxu3 %vm449_vm3, %v2696_v4  ;;  %v2297_v50 = vpack.c.b16 %v2290_v62, %v2289_v17  ;;  %v2610_v15 = vrot.slane %v2609_v27, 4  ;;  %v2614_v31 = vrot.slane %v2612_v60, 5  ;;  %v2648_v51 = vshll.u32 %v2568_v46, 16 }
 0x1df   : > { %v2629_v7 = vsel %vm3439_vm4, %v2624_v33, %v2628_v10  ;;  %v2224_v13 = vor.u32 %v2223_v19, %v2220_v14  ;;  %v2633_v30 = vrot.slane %v2631_v53, 4  ;;  %v2647_v0 = vrot.slane %v2645_v6, 4  ;;  %v4447_v19 = vld [vmem:[#allocation2 + $0x30] sm:$0xf]  ;;  %v4451_v10 = vld [vmem:[#allocation2 + $0x44] sm:$0x1] }
 0x1e0   : > { %v2636_v59 = vrot.slane %v2634_v63, 5  ;;  %v2650_v54 = vrot.slane %v2648_v51, 5  ;;  %v2232_v28 = vshrl.u32 %v2167_v2, 16  ;;  %v2235_v26 = vshll.u32 %v2167_v2, 16 }
 0x1e1   : > { %v2210_v21 = vor.u32 %v2209_v61, %v2206_v44  ;;  %v2213_v42 = vshll.u32 %v4393_v43, 16  ;;  %v2227_v11 = vshll.u32 %v4387_v40, 16  ;;  %v3228_v32 = vrot.slane %v2357_v1, 9  ;;  %v2360_v44 = vld [vmem:[#allocation2 + $0x40] sm:$0xe] }
 0x1e2   : > { %v2615_v4 = vsel %vm3439_vm4, %v2610_v15, %v2614_v31  ;;  %v2395_v56 = vrot.slane %v4422_v3, 5  ;;  %v2246_v58 = vshrl.u32 %v2169_v24, 16  ;;  %v2249_v48 = vshll.u32 %v2169_v24, 16 }
 0x1e3   : > { %v2691_v57 = vunpack.c.l.b16 %v2629_v7  ;;  %v2225_v25 = vrot.slane %v2224_v13, 4  ;;  %v3229_v36 = vrot.slane %v2358_v8, 9  ;;  %v2651_v43 = vor.u32 %v2650_v54, %v2647_v0  ;;  %v2359_v7 = vld [vmem:[#allocation2 + $0x38] sm:$0xe]  ;;  %v2570_v13 = vld [vmem:[#allocation2 + $0x40] sm:$0xf] }
 0x1e4   : > { %v2399_v40 = vrot.slane %v4428_v12, 5  ;;  %v2637_v39 = vor.u32 %v2636_v59, %v2633_v30  ;;  %v2234_v5 = vrot.slane %v2232_v28, 4  ;;  %v2237_v45 = vrot.slane %v2235_v26, 5 }
 0x1e5   : > { %3220 = vmatmul.msk.bf16.vlgmr.msrb.gmra.mxu0 %vm449_vm3, %v2297_v50  ;;  %v2690_v37 = vunpack.c.l.b16 %v2615_v4  ;;  %v2211_v20 = vrot.slane %v2210_v21, 4  ;;  %v2229_v52 = vrot.slane %v2227_v11, 5  ;;  %v2654_v16 = vshll.u32 %v4433_v18, 16  ;;  %v4458_v50 = vld [vmem:[#allocation2 + $0x3c] sm:$0x1] }
 0x1e6   : > { %3234 = vmatmul.msk.bf16.gmra.mxu1 %vm449_vm3, %v2420_v29  ;;  %v2396_v62 = vsel %vm3541_vm7, %v3228_v32, %v2395_v56  ;;  %v2640_v27 = vshll.u32 %v4435_v9, 16  ;;  %v2248_v60 = vrot.slane %v2246_v58, 4  ;;  %v2251_v46 = vrot.slane %v2249_v48, 5  ;;  %v2752_v21 = vld [vmem:[#allocation2 + $0x10] sm:$0xe] }
 0x1e7   : > { %v2697_v55 = vpack.c.b16 %v2691_v57, %v2690_v37  ;;  %v2215_v33 = vrot.slane %v2213_v42, 5  ;;  %v2230_v14 = vsel %vm3439_vm4, %v2225_v25, %v2229_v52  ;;  %v2652_v53 = vrot.slane %v2651_v43, 4  ;;  %v2572_v11 = vld [vmem:[#allocation2 + $0x48] sm:$0xf] }
 0x1e8   : > { %v2400_v17 = vsel %vm3541_vm7, %v3229_v36, %v2399_v40  ;;  %v2638_v29 = vrot.slane %v2637_v39, 4  ;;  %v2238_v63 = vor.u32 %v2237_v45, %v2234_v5  ;;  %v2415_v61 = vunpack.c.l.b16 %v2396_v62  ;;  %v2753_v40 = vld [vmem:[#allocation2 + $0x18] sm:$0xe] }
 0x1e9   : > { %v3249_v6 = vor.u32 %v4441_v22, %v4447_v19  ;;  %v2656_v2 = vrot.slane %v2654_v16, 5  ;;  %v2292_v15 = vunpack.c.l.b16 %v2230_v14  ;;  %v2642_v31 = vrot.slane %v2640_v27, 5  ;;  %v2171_v27 = vld [vmem:[#allocation2 + $0x38] sm:$0xf] }
 0x1ea   : > { %v2241_v1 = vshll.u32 %v4422_v3, 16  ;;  %v2252_v51 = vor.u32 %v2251_v46, %v2248_v60  ;;  %v2416_v30 = vunpack.c.l.b16 %v2400_v17  ;;  %v3231_v24 = vrot.slane %v2360_v44, 9 }
 0x1eb   : > { %v2657_v0 = vsel %vm3439_vm4, %v2652_v53, %v2656_v2  ;;  %v2407_v8 = vrot.slane %v4451_v10, 5  ;;  %v2643_v54 = vsel %vm3439_vm4, %v2638_v29, %v2642_v31  ;;  %v2239_v28 = vrot.slane %v2238_v63, 4  ;;  %v2755_v53 = vld [vmem:[#allocation2 + $0x28] sm:$0xe]  ;;  %v4484_v29 = vld [vmem:[#allocation2 + $0x4c] sm:$0x1] }
 0x1ec   : > { %3255 = vmatmul.msk.bf16.gmra.mxu2 %vm449_vm3, %v3245_v49  ;;  %v2216_v49 = vsel %vm3439_vm4, %v2211_v20, %v2215_v33  ;;  %v2255_v26 = vshll.u32 %v4428_v12, 16  ;;  %v3230_v42 = vrot.slane %v2359_v7, 9  ;;  %v2403_v3 = vrot.slane %v4458_v50, 5  ;;  %v2754_v20 = vld [vmem:[#allocation2 + $0x20] sm:$0xe] }
 0x1ed   : > { %v2291_v59 = vunpack.c.l.b16 %v2216_v49  ;;  %v2659_v32 = vshrl.u32 %v2570_v13, 16  ;;  %v2662_v4 = vshll.u32 %v2570_v13, 16  ;;  %v2693_v58 = vunpack.c.l.b16 %v2657_v0  ;;  %v2173_v63 = vld [vmem:[#allocation2 + $0x40] sm:$0xf]  ;;  %v2571_v0 = vld [vmem:[#allocation2 + $0x44] sm:$0x1] }
 0x1ee   : > { %3260 = vmatmul.msk.bf16.gmra.mxu3 %vm449_vm3, %v2697_v55  ;;  %v2243_v48 = vrot.slane %v2241_v1, 5  ;;  %v2253_v57 = vrot.slane %v2252_v51, 4  ;;  %v2421_v25 = vpack.c.b16 %v2416_v30, %v2415_v61  ;;  %v2692_v36 = vunpack.c.l.b16 %v2643_v54  ;;  %v2756_v1 = vld [vmem:[#allocation2 + $0x30] sm:$0xe] }
 0x1ef   : > { %v2298_v56 = vpack.c.b16 %v2292_v15, %v2291_v59  ;;  %v4470_v43 = vsel %vm3541_vm7, %v3231_v24, %v2407_v8  ;;  %v3263_v39 = vrot.slane %v2752_v21, 9  ;;  %v2257_v5 = vrot.slane %v2255_v26, 5 }
 0x1f0   : > { %v2244_v12 = vsel %vm3439_vm4, %v2239_v28, %v2243_v48  ;;  %v2673_v45 = vshrl.u32 %v2572_v11, 16  ;;  %v2676_v37 = vshll.u32 %v2572_v11, 16  ;;  %v4478_v52 = vsel %vm3541_vm7, %v3230_v42, %v2403_v3 }
 0x1f1   : > { %v2661_v16 = vrot.slane %v2659_v32, 4  ;;  %v2664_v62 = vrot.slane %v2662_v4, 5  ;;  %v2778_v60 = vrot.slane %v4369_v23, 5  ;;  %v2698_v46 = vpack.c.b16 %v2693_v58, %v2692_v36 }
 0x1f2   : > { %v2258_v55 = vsel %vm3439_vm4, %v2253_v57, %v2257_v5  ;;  %v2418_v33 = vunpack.c.l.b16 %v4470_v43  ;;  %v3264_v14 = vrot.slane %v2753_v40, 9  ;;  %v2293_v17 = vunpack.c.l.b16 %v2244_v12 }
 0x1f3   : > { %v2779_v44 = vsel %vm3541_vm7, %v3263_v39, %v2778_v60  ;;  %v2782_v49 = vrot.slane %v4371_v41, 5  ;;  %v3265_v61 = vrot.slane %v2754_v20, 9  ;;  %v2675_v2 = vrot.slane %v2673_v45, 4 }
 0x1f4   : > { %v2678_v23 = vrot.slane %v2676_v37, 5  ;;  %v2682_v15 = vshll.u32 %v4484_v29, 16  ;;  %v2260_v31 = vshrl.u32 %v2171_v27, 16  ;;  %v2665_v51 = vor.u32 %v2664_v62, %v2661_v16 }
 0x1f5   : > { %3221 = vmatmul.msk.bf16.gmra.mxu0 %vm449_vm3, %v2298_v56  ;;  %v2783_v7 = vsel %vm3541_vm7, %v3264_v14, %v2782_v49  ;;  %v2786_v13 = vrot.slane %v4410_v47, 5  ;;  %v3266_v30 = vrot.slane %v2755_v53, 9  ;;  %v2274_v24 = vshrl.u32 %v2173_v63, 16  ;;  %v2758_v53 = vld [vmem:[#allocation2 + $0x40] sm:$0xe] }
 0x1f6   : > { %3235 = vmatmul.msk.bf16.gmra.mxu1 %vm449_vm3, %v2421_v25  ;;  %v2810_v8 = vunpack.c.l.b16 %v2779_v44  ;;  %v2811_v59 = vunpack.c.l.b16 %v2783_v7  ;;  %v2790_v41 = vrot.slane %v4405_v34, 5  ;;  %v2277_v54 = vshll.u32 %v2173_v63, 16  ;;  %v2757_v34 = vld [vmem:[#allocation2 + $0x38] sm:$0xe]  ;;  %v3252_v49 = vld [vmem:[#allocation2 + $0x40] sm:$0xf] }
 0x1f7   : > { %v2787_v28 = vsel %vm3541_vm7, %v3265_v61, %v2786_v13  ;;  %v3267_v26 = vrot.slane %v2756_v1, 9  ;;  %v2794_v21 = vrot.slane %v4435_v9, 5  ;;  %v2679_v47 = vor.u32 %v2678_v23, %v2675_v2  ;;  %v3290_v61 = vld [vmem:[#allocation2 + $0x44] sm:$0xf0] }
 0x1f8   : > { %v2263_v42 = vshll.u32 %v2171_v27, 16  ;;  %v4501_v3 = vpack.c.b16 %v2811_v59, %v2810_v8  ;;  %v2791_v11 = vsel %vm3541_vm7, %v3266_v30, %v2790_v41  ;;  %v2668_v22 = vshll.u32 %v2571_v0, 16 }
 0x1f9   : > { %v2812_v19 = vunpack.c.l.b16 %v2787_v28  ;;  %v3268_v32 = vrot.slane %v2757_v34, 9  ;;  %v2294_v4 = vunpack.c.l.b16 %v2258_v55  ;;  %v2684_v56 = vrot.slane %v2682_v15, 5 }
 0x1fa   : > { %v2795_v58 = vsel %vm3541_vm7, %v3267_v26, %v2794_v21  ;;  %v2798_v9 = vrot.slane %v4433_v18, 5  ;;  %v2666_v48 = vrot.slane %v2665_v51, 4  ;;  %v2276_v57 = vrot.slane %v2274_v24, 4 }
 0x1fb   : > { %v2279_v25 = vrot.slane %v2277_v54, 5  ;;  %v2680_v43 = vrot.slane %v2679_v47, 4  ;;  %v2262_v40 = vrot.slane %v2260_v31, 4  ;;  %v2265_v39 = vrot.slane %v2263_v42, 5 }
 0x1fc   : > { %3256 = vmatmul.msk.bf16.gmra.mxu2 %vm449_vm3, %v3249_v6  ;;  %v2813_v6 = vunpack.c.l.b16 %v2791_v11  ;;  %v2799_v12 = vsel %vm3541_vm7, %v3268_v32, %v2798_v9  ;;  %v2417_v5 = vunpack.c.l.b16 %v4478_v52  ;;  %v2670_v45 = vrot.slane %v2668_v22, 5  ;;  %v2759_v52 = vld [vmem:[#allocation2 + $0x48] sm:$0xe] }
 0x1fd   : > { %v2814_v37 = vunpack.c.l.b16 %v2795_v58  ;;  %v2815_v20 = vunpack.c.l.b16 %v2799_v12  ;;  %v2299_v16 = vpack.c.b16 %v2294_v4, %v2293_v17  ;;  %v2280_v27 = vor.u32 %v2279_v25, %v2276_v57 }
 0x1fe   : > { %3261 = vmatmul.msk.bf16.gmra.mxu3 %vm449_vm3, %v2698_v46  ;;  %v2819_v36 = vpack.c.b16 %v2813_v6, %v2812_v19  ;;  %v2422_v62 = vpack.c.b16 %v2418_v33, %v2417_v5  ;;  %v2671_v18 = vsel %vm3439_vm4, %v2666_v48, %v2670_v45  ;;  %v2685_v46 = vsel %vm3439_vm4, %v2680_v43, %v2684_v56 }
 0x1ff   : > { %v2820_v60 = vpack.c.b16 %v2815_v20, %v2814_v37  ;;  %v2266_v55 = vor.u32 %v2265_v39, %v2262_v40  ;;  %v2283_v14 = vshll.u32 %v4451_v10, 16  ;;  %v3269_v63 = vrot.slane %v2758_v53, 9 }
 0x200   : > { %v2802_v17 = vrot.slane %v2571_v0, 5  ;;  %v3270_v33 = vrot.slane %v2759_v52, 9  ;;  %v2806_v44 = vrot.slane %v4484_v29, 5  ;;  %v2694_v2 = vunpack.c.l.b16 %v2671_v18 }
 0x201   : > { %v2269_v23 = vshll.u32 %v4458_v50, 16  ;;  %v2695_v15 = vunpack.c.l.b16 %v2685_v46  ;;  %v2281_v31 = vrot.slane %v2280_v27, 4  ;;  %v3253_v13 = vor.u32 %v3290_v61, %v3252_v49 }
 0x202   : > { %v2803_v1 = vsel %vm3541_vm7, %v3269_v63, %v2802_v17  ;;  %v2807_v10 = vsel %vm3541_vm7, %v3270_v33, %v2806_v44  ;;  %v2267_v30 = vrot.slane %v2266_v55, 4  ;;  %v2285_v0 = vrot.slane %v2283_v14, 5 }
 0x203   : > { %v2816_v51 = vunpack.c.l.b16 %v2803_v1  ;;  %v2817_v7 = vunpack.c.l.b16 %v2807_v10  ;;  %v2699_v29 = vpack.c.b16 %v2695_v15, %v2694_v2  ;;  %v2271_v8 = vrot.slane %v2269_v23, 5 }
 0x204   : > { %v2286_v50 = vsel %vm3439_vm4, %v2281_v31, %v2285_v0  ;;  %vm2894_vm0 = vcmask 125952  }
 0x205   : > { %3222 = vmatmul.msk.bf16.gmra.mxu0 %vm449_vm3, %v2299_v16  ;;  %v2821_v24 = vpack.c.b16 %v2817_v7, %v2816_v51  ;;  %v2272_v59 = vsel %vm3439_vm4, %v2267_v30, %v2271_v8  ;;  %v2296_v38 = vunpack.c.l.b16 %v2286_v50 }
 0x206   : > { %3236 = vmatmul.msk.bf16.gmra.mxu1 %vm449_vm3, %v2422_v62  ;;  %v2295_v41 = vunpack.c.l.b16 %v2272_v59 }
 0x208   : > { %v2300_v54 = vpack.c.b16 %v2296_v38, %v2295_v41  ;;  %v4582_v38 = vld [vmem:[%s4666_s4] ss:$0 sm:$0xff] }
 0x20c   : > { %3257 = vmatmul.msk.bf16.gmra.mxu2 %vm449_vm3, %v3253_v13 }
 0x20e   : > { %3262 = vmatmul.msk.bf16.gmra.mxu3 %vm449_vm3, %v2699_v29 }
 0x213   : > { %v1935_v47 = vpop.f32.mrf.mxu1 }
 0x215   : > { %3223 = vmatmul.msk.bf16.gmra.mxu0 %vm449_vm3, %v2300_v54 }
 0x21b   : > { %v1937_v22 = vpop.f32.mrf.mxu1 }
 0x21f   : > { %v2049_v11 = vpop.f32.mrf.mxu2 }
 0x221   : > { %v2131_v34 = vpop.f32.mrf.mxu3 }
 0x222   : > { %v1871_v28 = vpop.f32.mrf.mxu0 }
 0x223   : > { %v1940_v4 = vpop.f32.mrf.mxu1  ;;  %v1936_v63 = vadd.f32 %v1935_v47, %v1871_v28 }
 0x225   : > { %3272 = vmatmul.msk.bf16.vlgmr.msra.gmra.mxu0 %vm449_vm3, %v4501_v3  ;;  %v2069_v33 = vadd.f32 %v2049_v11, %v1936_v63 }
 0x227   : > { %v2051_v19 = vpop.f32.mrf.mxu2  ;;  %v2151_v61 = vadd.f32 %v2131_v34, %v2069_v33 }
 0x229   : > { %v2133_v32 = vpop.f32.mrf.mxu3 }
 0x22a   : > { %v1873_v26 = vpop.f32.mrf.mxu0 }
 0x22b   : > { %v1942_v9 = vpop.f32.mrf.mxu1  ;;  %v1938_v2 = vadd.f32 %v1937_v22, %v1873_v26 }
 0x22d   : > { %v2070_v31 = vadd.f32 %v2051_v19, %v1938_v2 }
 0x22f   : > { %v2054_v3 = vpop.f32.mrf.mxu2  ;;  %v2152_v7 = vadd.f32 %v2133_v32, %v2070_v31 }
 0x231   : > { %v2136_v58 = vpop.f32.mrf.mxu3 }
 0x232   : > { %v1876_v21 = vpop.f32.mrf.mxu0 }
 0x233   : > { %v1941_v13 = vadd.f32 %v1940_v4, %v1876_v21 }
 0x235   : > { %3273 = vmatmul.msk.bf16.gmra.mxu0 %vm449_vm3, %v2819_v36  ;;  %v1945_v36 = vpop.f32.mrf.mxu1  ;;  %v2071_v8 = vadd.f32 %v2054_v3, %v1941_v13 }
 0x237   : > { %v2056_v57 = vpop.f32.mrf.mxu2  ;;  %v2153_v28 = vadd.f32 %v2136_v58, %v2071_v8 }
 0x239   : > { %v4547_v25 = vpop.f32.mrf.mxu3 }
 0x23a   : > { %v4535_v42 = vpop.f32.mrf.mxu0 }
 0x23b   : > { %v1943_v26 = vadd.f32 %v1942_v9, %v4535_v42 }
 0x23d   : > { %v4553_v5 = vpop.f32.mrf.mxu1  ;;  %v2072_v19 = vadd.f32 %v2056_v57, %v1943_v26 }
 0x23f   : > { %v4549_v40 = vpop.f32.mrf.mxu2 }
 0x241   : > { %v4551_v39 = vpop.f32.mrf.mxu3 }
 0x242   : > { %v4537_v35 = vpop.f32.mrf.mxu0 }
 0x243   : > { %v1946_v42 = vadd.f32 %v1945_v36, %v4537_v35 }
 0x245   : > { %3274 = vmatmul.msk.bf16.gmra.mxu0 %vm449_vm3, %v2820_v60  ;;  %v4559_v16 = vpop.f32.mrf.mxu1  ;;  %v2073_v33 = vadd.f32 %v4549_v40, %v1946_v42 }
 0x247   : > { %v4555_v45 = vpop.f32.mrf.mxu2 }
 0x249   : > { %v4557_v20 = vpop.f32.mrf.mxu3 }
 0x24a   : > { %v4540_v6 = vpop.f32.mrf.mxu0 }
 0x24b   : > { %v1948_v13 = vadd.f32 %v4553_v5, %v4540_v6 }
 0x24d   : > { %v4565_v60 = vpop.f32.mrf.mxu1 }
 0x24f   : > { %v4561_v62 = vpop.f32.mrf.mxu2 }
 0x251   : > { %v4563_v27 = vpop.f32.mrf.mxu3 }
 0x252   : > { %v4542_v56 = vpop.f32.mrf.mxu0 }
 0x255   : > { %3275 = vmatmul.msk.bf16.gmra.mxu0 %vm449_vm3, %v2821_v24  ;;  %v2447_v53 = vpop.f32.mrf.mxu1  ;;  %vm2925_vm3 = vcmask 122880  }
 0x257   : > { %v4569_v55 = vpop.f32.mrf.mxu2 }
 0x259   : > { %v4571_v14 = vpop.f32.mrf.mxu3 }
 0x25a   : > { %v4545_v48 = vpop.f32.mrf.mxu0 }
 0x25d   : > { %v2449_v23 = vpop.f32.mrf.mxu1 }
 0x25f   : > { %v2530_v17 = vpop.f32.mrf.mxu2 }
 0x261   : > { %v2724_v44 = vpop.f32.mrf.mxu3 }
 0x262   : > { %v2325_v43 = vpop.f32.mrf.mxu0 }
 0x263   : > { %v2345_v15 = vadd.f32 %v2325_v43, %v2151_v61  ;;  %v2154_v43 = vadd.f32 %v4547_v25, %v2072_v19 }
 0x265   : > { %v2467_v10 = vadd.f32 %v2447_v53, %v2345_v15  ;;  %v2452_v29 = vpop.f32.mrf.mxu1 }
 0x267   : > { %v2532_v1 = vpop.f32.mrf.mxu2  ;;  %v2550_v0 = vadd.f32 %v2530_v17, %v2467_v10 }
 0x269   : > { %v2726_v30 = vpop.f32.mrf.mxu3  ;;  %v2744_v50 = vadd.f32 %v2724_v44, %v2550_v0 }
 0x26a   : > { %v2327_v12 = vpop.f32.mrf.mxu0 }
 0x26b   : > { %v2346_v24 = vadd.f32 %v2327_v12, %v2152_v7  ;;  %v2155_v7 = vadd.f32 %v4551_v39, %v2073_v33 }
 0x26d   : > { %v2468_v59 = vadd.f32 %v2449_v23, %v2346_v24  ;;  %v2454_v4 = vpop.f32.mrf.mxu1 }
 0x26f   : > { %v2535_v41 = vpop.f32.mrf.mxu2  ;;  %v2551_v21 = vadd.f32 %v2532_v1, %v2468_v59 }
 0x271   : > { %v2729_v22 = vpop.f32.mrf.mxu3  ;;  %v2745_v3 = vadd.f32 %v2726_v30, %v2551_v21 }
 0x272   : > { %v2330_v37 = vpop.f32.mrf.mxu0 }
 0x273   : > { %v2347_v11 = vadd.f32 %v2330_v37, %v2153_v28 }
 0x275   : > { %v2469_v58 = vadd.f32 %v2452_v29, %v2347_v11  ;;  %v2457_v1 = vpop.f32.mrf.mxu1 }
 0x277   : > { %v2537_v37 = vpop.f32.mrf.mxu2  ;;  %v2552_v53 = vadd.f32 %v2535_v41, %v2469_v58 }
 0x279   : > { %v2731_v36 = vpop.f32.mrf.mxu3  ;;  %v2746_v25 = vadd.f32 %v2729_v22, %v2552_v53 }
 0x27a   : > { %v2332_v18 = vpop.f32.mrf.mxu0 }
 0x27b   : > { %v2348_v63 = vadd.f32 %v2332_v18, %v2154_v43 }
 0x27d   : > { %v2470_v15 = vadd.f32 %v2454_v4, %v2348_v63 }
 0x27f   : > { %v2553_v0 = vadd.f32 %v2537_v37, %v2470_v15  ;;  %v2540_v8 = vpop.f32.mrf.mxu2 }
 0x281   : > { %v2747_v26 = vadd.f32 %v2731_v36, %v2553_v0  ;;  %v2734_v39 = vpop.f32.mrf.mxu3 }
 0x282   : > { %v4567_v46 = vpop.f32.mrf.mxu0 }
 0x283   : > { %v2349_v24 = vadd.f32 %v4567_v46, %v2155_v7 }
 0x289   : > { %v2736_v63 = vpop.f32.mrf.mxu3 }
 0x28a   : > { %v4573_v52 = vpop.f32.mrf.mxu0 }
 0x292   : > { %v4575_v49 = vpop.f32.mrf.mxu0 }
 0x29a   : > { %v4577_v51 = vpop.f32.mrf.mxu0 }
 0x2a2   : > { %v2846_v54 = vpop.f32.mrf.mxu0 }
 0x2a3   : > { %v2866_v47 = vadd.f32 %v2846_v54, %v2744_v50  ;;  %v2074_v50 = vadd.f32 %v4555_v45, %v1948_v13  ;;  %v1951_v45 = vadd.f32 %v4559_v16, %v4542_v56 }
 0x2a5   : > { %v2878_v34 = vadd.f32 %v4582_v38, %v2866_v47  ;;  %v2471_v47 = vadd.f32 %v2457_v1, %v2349_v24  ;;  %v2156_v46 = vadd.f32 %v4557_v20, %v2074_v50  ;;  %v2075_v4 = vadd.f32 %v4561_v62, %v1951_v45 }
 0x2a6   : > { %v1953_v62 = vadd.f32 %v4565_v60, %v4545_v48 }
 0x2a7   : > { %v2886_v32 = vpack.c.bf16 %v2878_v34, %v2878_v34  ;;  %v2927_v17 = vmul.f32 %v2878_v34, %v2878_v34  ;;  %v2904_v44 = vsel %vm2903_vm2, %v2878_v34, 0.0  ;;  %v2459_v34 = vpop.f32.mrf.mxu1  ;;  %v2554_v22 = vadd.f32 %v2540_v8, %v2471_v47 }
 0x2a8   : > { %v2350_v19 = vadd.f32 %v4573_v52, %v2156_v46  ;;  %v2157_v52 = vadd.f32 %v4563_v27, %v2075_v4 }
 0x2a9   : > { %2895 = vst.msk [vmem:[%s4590_s22] sm:$0xf] %vm2894_vm0, %v2886_v32  ;;  %v2935_v31 = vsel %vm2903_vm2, %v2927_v17, 0.0 }
 0x2aa   : > { %v2848_v9 = vpop.f32.mrf.mxu0  ;;  %v2472_v20 = vadd.f32 %v2459_v34, %v2350_v19 }
 0x2ab   : > { %v2867_v12 = vadd.f32 %v2848_v9, %v2745_v3  ;;  %v2542_v9 = vpop.f32.mrf.mxu2 }
 0x2ac   : > { %v2555_v17 = vadd.f32 %v2542_v9, %v2472_v20 }
 0x2ad   : > { %v2879_v57 = vadd.f32 %v4582_v38, %v2867_v12  ;;  %v2748_v12 = vadd.f32 %v2734_v39, %v2554_v22 }
 0x2af   : > { %v2887_v61 = vpack.c.bf16 %v2879_v57, %v2879_v57  ;;  %v2905_v2 = vsel %vm2903_vm2, %v2879_v57, 0.0  ;;  %v2928_v35 = vmul.f32 %v2879_v57, %v2879_v57  ;;  %v2351_v57 = vadd.f32 %v4575_v49, %v2157_v52 }
 0x2b0   : > { %v2906_v23 = vadd.f32 %v2905_v2, %v2904_v44  ;;  %v2462_v44 = vpop.f32.mrf.mxu1 }
 0x2b1   : > { %2896 = vst.msk [vmem:[%s4590_s22 + $0x4] sm:$0xf] %vm2894_vm0, %v2887_v61  ;;  %v2936_v18 = vsel %vm2903_vm2, %v2928_v35, 0.0  ;;  %v2076_v61 = vadd.f32 %v4569_v55, %v1953_v62  ;;  %v2473_v27 = vadd.f32 %v2462_v44, %v2351_v57 }
 0x2b2   : > { %v2937_v10 = vadd.f32 %v2936_v18, %v2935_v31  ;;  %v2851_v40 = vpop.f32.mrf.mxu0 }
 0x2b3   : > { %v2868_v30 = vadd.f32 %v2851_v40, %v2746_v25  ;;  %v2749_v25 = vadd.f32 %v2736_v63, %v2555_v17  ;;  %v2545_v60 = vpop.f32.mrf.mxu2  ;;  %v2158_v31 = vadd.f32 %v4571_v14, %v2076_v61  ;;  %v2739_v40 = vpop.f32.mrf.mxu3 }
 0x2b4   : > { %v2556_v1 = vadd.f32 %v2545_v60, %v2473_v27 }
 0x2b5   : > { %v2880_v29 = vadd.f32 %v4582_v38, %v2868_v30  ;;  %v2352_v55 = vadd.f32 %v4577_v51, %v2158_v31 }
 0x2b7   : > { %v2888_v59 = vpack.c.bf16 %v2880_v29, %v2880_v29  ;;  %v2907_v41 = vsel %vm2903_vm2, %v2880_v29, 0.0  ;;  %v2929_v54 = vmul.f32 %v2880_v29, %v2880_v29  ;;  %v2750_v29 = vadd.f32 %v2739_v40, %v2556_v1 }
 0x2b8   : > { %v2908_v28 = vadd.f32 %v2907_v41, %v2906_v23  ;;  %v2464_v0 = vpop.f32.mrf.mxu1 }
 0x2b9   : > { %2897 = vst.msk [vmem:[%s4590_s22 + $0x8] sm:$0xf] %vm2894_vm0, %v2888_v59  ;;  %v2938_v6 = vsel %vm2903_vm2, %v2929_v54, 0.0  ;;  %v2474_v8 = vadd.f32 %v2464_v0, %v2352_v55 }
 0x2ba   : > { %v2939_v5 = vadd.f32 %v2938_v6, %v2937_v10  ;;  %v2853_v21 = vpop.f32.mrf.mxu0 }
 0x2bb   : > { %v2869_v11 = vadd.f32 %v2853_v21, %v2747_v26  ;;  %v2547_v51 = vpop.f32.mrf.mxu2  ;;  %v2741_v39 = vpop.f32.mrf.mxu3 }
 0x2bc   : > { %v2557_v54 = vadd.f32 %v2547_v51, %v2474_v8 }
 0x2bd   : > { %v2881_v32 = vadd.f32 %v4582_v38, %v2869_v11 }
 0x2be   : > { %v2751_v21 = vadd.f32 %v2741_v39, %v2557_v54 }
 0x2bf   : > { %v2889_v3 = vpack.c.bf16 %v2881_v32, %v2881_v32  ;;  %v2909_v58 = vsel %vm2903_vm2, %v2881_v32, 0.0  ;;  %v2930_v42 = vmul.f32 %v2881_v32, %v2881_v32 }
 0x2c0   : > { %v2910_v43 = vadd.f32 %v2909_v58, %v2908_v28 }
 0x2c1   : > { %2898 = vst.msk [vmem:[%s4590_s22 + $0xc] sm:$0xf] %vm2894_vm0, %v2889_v3  ;;  %v2940_v56 = vsel %vm2903_vm2, %v2930_v42, 0.0 }
 0x2c2   : > { %v2941_v16 = vadd.f32 %v2940_v56, %v2939_v5  ;;  %v2856_v37 = vpop.f32.mrf.mxu0 }
 0x2c3   : > { %v2870_v53 = vadd.f32 %v2856_v37, %v2748_v12 }
 0x2c5   : > { %v2882_v33 = vadd.f32 %v4582_v38, %v2870_v53 }
 0x2c7   : > { %v2890_v2 = vpack.c.bf16 %v2882_v33, %v2882_v33  ;;  %v2911_v35 = vsel %vm2903_vm2, %v2882_v33, 0.0  ;;  %v2931_v36 = vmul.f32 %v2882_v33, %v2882_v33 }
 0x2c8   : > { %v2912_v23 = vadd.f32 %v2911_v35, %v2910_v43 }
 0x2c9   : > { %2899 = vst.msk [vmem:[%s4590_s22 + $0x10] sm:$0xf] %vm2894_vm0, %v2890_v2  ;;  %v2942_v48 = vsel %vm2903_vm2, %v2931_v36, 0.0 }
 0x2ca   : > { %v2943_v15 = vadd.f32 %v2942_v48, %v2941_v16  ;;  %v2858_v49 = vpop.f32.mrf.mxu0 }
 0x2cb   : > { %v2871_v18 = vadd.f32 %v2858_v49, %v2749_v25 }
 0x2cd   : > { %v2883_v10 = vadd.f32 %v4582_v38, %v2871_v18 }
 0x2cf   : > { %v2891_v7 = vpack.c.bf16 %v2883_v10, %v2883_v10  ;;  %v2913_v13 = vsel %vm2903_vm2, %v2883_v10, 0.0  ;;  %v2932_v30 = vmul.f32 %v2883_v10, %v2883_v10 }
 0x2d0   : > { %v2914_v24 = vadd.f32 %v2913_v13, %v2912_v23 }
 0x2d1   : > { %2900 = vst.msk [vmem:[%s4590_s22 + $0x14] sm:$0xf] %vm2894_vm0, %v2891_v7  ;;  %v2944_v14 = vsel %vm2903_vm2, %v2932_v30, 0.0 }
 0x2d2   : > { %v2945_v50 = vadd.f32 %v2944_v14, %v2943_v15  ;;  %v2861_v59 = vpop.f32.mrf.mxu0 }
 0x2d3   : > { %v2872_v41 = vadd.f32 %v2861_v59, %v2750_v29 }
 0x2d5   : > { %v2884_v28 = vadd.f32 %v4582_v38, %v2872_v41 }
 0x2d7   : > { %v2892_v26 = vpack.c.bf16 %v2884_v28, %v2884_v28  ;;  %v2915_v47 = vsel %vm2903_vm2, %v2884_v28, 0.0  ;;  %v2933_v6 = vmul.f32 %v2884_v28, %v2884_v28 }
 0x2d8   : > { %v2916_v5 = vadd.f32 %v2915_v47, %v2914_v24 }
 0x2d9   : > { %2901 = vst.msk [vmem:[%s4590_s22 + $0x18] sm:$0xf] %vm2894_vm0, %v2892_v26  ;;  %v2946_v46 = vsel %vm2903_vm2, %v2933_v6, 0.0 }
 0x2da   : > { %v2947_v45 = vadd.f32 %v2946_v46, %v2945_v50  ;;  %v2863_v11 = vpop.f32.mrf.mxu0 }
 0x2db   : > { %v2873_v34 = vadd.f32 %v2863_v11, %v2751_v21 }
 0x2dd   : > { %v2885_v22 = vadd.f32 %v4582_v38, %v2873_v34 }
 0x2df   : > { %v2893_v19 = vpack.c.bf16 %v2885_v22, %v2885_v22  ;;  %v2917_v32 = vsel %vm2903_vm2, %v2885_v22, 0.0  ;;  %v2934_v4 = vmul.f32 %v2885_v22, %v2885_v22 }
 0x2e0   : > { %v2918_v3 = vadd.f32 %v2917_v32, %v2916_v5 }
 0x2e1   : > { %2902 = vst.msk [vmem:[%s4590_s22 + $0x1c] sm:$0xf] %vm2894_vm0, %v2893_v19  ;;  %v2948_v58 = vsel %vm2903_vm2, %v2934_v4, 0.0 }
 0x2e2   : > { %v2919_v42 = vrot.slane %v2918_v3, 4  ;;  %v2949_v9 = vadd.f32 %v2948_v58, %v2947_v45 }
 0x2e4   : > { %v2920_v43 = vadd.f32 %v2919_v42, %v2918_v3  ;;  %v2950_v12 = vrot.slane %v2949_v9, 4 }
 0x2e6   : > { %v2921_v20 = vrot.slane %v2920_v43, 2  ;;  %v2951_v56 = vadd.f32 %v2950_v12, %v2949_v9 }
 0x2e8   : > { %v2922_v16 = vadd.f32 %v2921_v20, %v2920_v43  ;;  %v2952_v37 = vrot.slane %v2951_v56, 2 }
 0x2ea   : > { %v2923_v38 = vrot.slane %v2922_v16, 1  ;;  %v2953_v52 = vadd.f32 %v2952_v37, %v2951_v56 }
 0x2ec   : > { %v2924_v62 = vadd.f32 %v2923_v38, %v2922_v16  ;;  %v2954_v53 = vrot.slane %v2953_v52, 1 }
 0x2ee   : > { %2926 = vst.msk [vmem:[%s292_s27] sm:$0x1] %vm2925_vm3, %v2924_v62  ;;  %v2955_v63 = vadd.f32 %v2954_v53, %v2953_v52 }
 0x2f0   : > { %2956 = vst.msk [vmem:[%s295_s30] sm:$0x1] %vm2925_vm3, %v2955_v63 }
 0x2f1 PF: > { %s18_s24 = sadd.s32 1, %s3312_s24  }
 0x2f2   : > { %p15_p4 = scmp.ge.s32.totalorder %s18_s24, 4  }
 0x2f4   :  { %17 = sbr.rel (!%p15_p4) target bundleno = 1 (0x1), region = 119 }

</bundles_post_ra>
